<compile_context>
chip_gen: v7x
topology: tpu7x:2x2x1
jax: 0.10.0
libtpu: 0.0.40
codegen_flags: <defaults>
</compile_context>

<pallas_src>
import functools

import jax
import jax.numpy as jnp
import numpy as np
from jax import lax
from jax.experimental import pallas as pl
from jax.experimental.pallas import tpu as pltpu

NETWORK_CHANNELS = 64

_CONV_CFGS = [
    # (cin, cout, KH, KW, (sh, sw), (ph, pw), leaky_slope)
    (64, 32, 4, 4, (2, 2), (1, 1), 0.2),
    (32, 16, 4, 4, (2, 2), (1, 1), 0.2),
    (16, 8, 4, 4, (2, 2), (1, 1), 0.2),
    (8, 4, 4, 4, (2, 2), (1, 1), 0.2),
    (4, 1, 4, 1, (2, 1), (1, 0), None),
]


# ---------------------------------------------------------------------------
# Fused kernel
# ---------------------------------------------------------------------------
def _expander_kernel(x_ref, w1_ref, b1_ref, m234_ref, b234_ref,
                     m5s_ref, m5x_ref, b5_ref, o_ref, *, bb, slope):
    f32 = jnp.float32
    bf16 = jnp.bfloat16
    zpad = jnp.zeros((bb, 128), f32)          # shared boundary-zero block

    def lrelu(y):
        return jnp.where(y > 0, y, slope * y)

    def shift_down(v):                         # row-group j <- j-1 (zeros at top)
        return jnp.concatenate([zpad, v[:-bb]], axis=0)

    def shift_up(v):                           # row-group j <- j+1 (zeros at bottom)
        return jnp.concatenate([v[bb:], zpad], axis=0)

    def interleave(y_even, y_odd, n_groups):   # rows (j,b) x parity -> rows (oh,b)
        blocks = []
        for j in range(n_groups):
            blocks.append(y_even[j * bb:(j + 1) * bb])
            blocks.append(y_odd[j * bb:(j + 1) * bb])
        return jnp.concatenate(blocks, axis=0)

    # ---- Layer 1: initial Linear folded into the first transposed conv ----
    x = x_ref[...].astype(bf16)                                         # (bb, 64)
    v = jnp.dot(x, w1_ref[...], preferred_element_type=f32)            # (bb, 768)
    b1 = b1_ref[...]                                                    # (4, 128)
    # column blocks of v: (ih=0,kh=1),(0,2),(0,3),(1,0),(1,1),(1,2)
    y0 = v[:, 0:128] + b1[0:1]                       # oh=0
    y1 = v[:, 128:256] + v[:, 384:512] + b1[1:2]     # oh=1
    y2 = v[:, 512:640] + v[:, 256:384] + b1[2:3]     # oh=2
    y3 = v[:, 640:768] + b1[3:4]                     # oh=3
    a = lrelu(jnp.concatenate([y0, y1, y2, y3], axis=0))                # (4*bb, 128)

    # ---- Layers 2..4 (k=4, stride 2, pad 1); rows stay (h, b) ----
    h = 4
    for l in range(3):
        bias = b234_ref[l]                                              # (1, 128)
        v = jnp.dot(a.astype(bf16), m234_ref[l],
                    preferred_element_type=f32)                         # (h*bb, 512)
        # even output rows (oh=2j): kh=1 tap @ j  +  kh=3 tap @ j-1
        y_even = lrelu(v[:, 128:256] + bias + shift_down(v[:, 384:512]))
        # odd  output rows (oh=2j+1): kh=2 tap @ j  +  kh=0 tap @ j+1
        y_odd = lrelu(v[:, 256:384] + bias + shift_up(v[:, 0:128]))
        if l < 2:
            a = interleave(y_even, y_odd, h)                            # (2h*bb, 128)
        else:
            # layer 4 -> layer 5 handoff: pack parity into lanes, no interleave
            a = jnp.concatenate([y_even, y_odd], axis=1)                # (16*bb, 256)
        h *= 2

    # ---- Layer 5 (kh=4, kw=1, cout=1): 4 output heights packed per row ----
    a_shift = jnp.concatenate(
        [shift_up(a[:, 0:128]), shift_down(a[:, 128:256])], axis=1)     # (16*bb, 256)
    out = (jnp.dot(a.astype(bf16), m5s_ref[...], preferred_element_type=f32)
           + jnp.dot(a_shift.astype(bf16), m5x_ref[...], preferred_element_type=f32)
           + b5_ref[...])
    o_ref[...] = out                              # rows (j, b), lanes (q, ow), oh=4j+q


# ---------------------------------------------------------------------------
# One-time operand preparation (batch-independent, bf16 matmul operands)
# ---------------------------------------------------------------------------
def _width_blocks(w_ct, w_in, sw, pw):
    """Per kernel-row width-tap matrix: (KH, Win*Cin, Wout*Cout)."""
    w_ct = np.asarray(w_ct, np.float32)
    cin, cout, kh_sz, kw_sz = w_ct.shape
    w_out = (w_in - 1) * sw - 2 * pw + kw_sz
    iw = np.arange(w_in)[:, None, None]
    ow = np.arange(w_out)[None, :, None]
    kw = np.arange(kw_sz)[None, None, :]
    sel = (kw == ow + pw - iw * sw).astype(np.float32)       # (Win, Wout, KW)
    m = np.einsum('IOk,cdhk->hIcOd', sel, w_ct)              # (KH, Win, Cin, Wout, Cout)
    return m.reshape(kh_sz, w_in * cin, w_out * cout)


def prepare_operands(params):
    f32 = np.float32

    # ---- layer 1: fold the initial Linear into the first deconv ----
    m1 = _width_blocks(params["w0"], 2, 2, 1)                           # (4, 128, 128)
    lin_w = np.asarray(params["initial_w"], f32).reshape(64, 64, 2, 2)  # (in, ci, ih, iw)
    lin_b = np.asarray(params["initial_b"], f32).reshape(64, 2, 2)      # (ci, ih, iw)
    wa = [np.transpose(lin_w[:, :, ih, :], (0, 2, 1)).reshape(64, 128)  # lane = iw*64+ci
          for ih in range(2)]
    ba = [np.transpose(lin_b[:, ih, :], (1, 0)).reshape(128) for ih in range(2)]

    pairs = [(0, 1), (0, 2), (0, 3), (1, 0), (1, 1), (1, 2)]            # used (ih, kh)
    w1f = np.concatenate([wa[ih] @ m1[kh] for ih, kh in pairs], axis=1)  # (64, 768)
    bv = {(ih, kh): ba[ih] @ m1[kh] for ih, kh in pairs}
    b1_tile = np.tile(np.asarray(params["b0"], f32), 4)                 # lanes (ow, co)
    b1rows = np.stack([
        bv[(0, 1)] + b1_tile,
        bv[(0, 2)] + bv[(1, 0)] + b1_tile,
        bv[(1, 1)] + bv[(0, 3)] + b1_tile,
        bv[(1, 2)] + b1_tile,
    ], axis=0)                                                          # (4, 128)

    # ---- layers 2..4: M (128, 4*128) with column block per kernel row ----
    m234, b234 = [], []
    w_in = 4
    for i in (1, 2, 3):
        blk = _width_blocks(params[f"w{i}"], w_in, 2, 1)                # (4, 128, 128)
        m234.append(np.transpose(blk, (1, 0, 2)).reshape(128, 512))
        w_out = 2 * w_in
        b234.append(np.tile(np.asarray(params[f"b{i}"], f32), w_out)[None, :])
        w_in = w_out
    m234 = np.stack(m234, axis=0)                                       # (3, 128, 512)
    b234 = np.stack(b234, axis=0)                                       # (3, 1, 128)

    # ---- layer 5: packed (parity, ow, ci) -> (q, ow) matrices ----
    w5 = np.asarray(params["w4"], f32)[:, 0, :, 0]                      # (ci=4, kh=4)
    m5s = np.zeros((256, 128), f32)
    m5x = np.zeros((256, 128), f32)
    same_map = {0: ((1, 0), (2, 1), (3, 2)), 1: ((0, 1), (1, 2), (2, 3))}
    shift_map = {0: ((0, 3),), 1: ((3, 0),)}   # p=0 half holds group j+1, p=1 holds j-1
    iw = np.arange(32)
    for p in (0, 1):
        for kh, q in same_map[p]:
            for ci in range(4):
                m5s[p * 128 + iw * 4 + ci, q * 32 + iw] = w5[ci, kh]
        for kh, q in shift_map[p]:
            for ci in range(4):
                m5x[p * 128 + iw * 4 + ci, q * 32 + iw] = w5[ci, kh]
    b5row = np.full((1, 128), float(np.asarray(params["b4"], f32)[0]), f32)

    bf16 = jnp.bfloat16
    return (jnp.asarray(w1f, bf16), jnp.asarray(b1rows, jnp.float32),
            jnp.asarray(m234, bf16), jnp.asarray(b234, jnp.float32),
            jnp.asarray(m5s, bf16), jnp.asarray(m5x, bf16),
            jnp.asarray(b5row, jnp.float32))


# ---------------------------------------------------------------------------
# Forward wrapper
# ---------------------------------------------------------------------------
def _round_up(n, m):
    return (n + m - 1) // m * m


def _const_index_map(ndim):
    def imap(i):
        return (0,) * ndim
    return imap


def expander_forward(ops, x, batch_block=None):
    x2 = x.reshape(-1, NETWORK_CHANNELS).astype(jnp.float32)
    b = x2.shape[0]
    if batch_block is None:
        bb = 128 if b >= 128 else _round_up(max(b, 8), 8)
    else:
        bb = batch_block
    assert bb % 8 == 0, bb
    b_pad = _round_up(b, bb)
    if b_pad != b:
        x2 = jnp.pad(x2, ((0, b_pad - b), (0, 0)))
    nblk = b_pad // bb

    kernel = functools.partial(_expander_kernel, bb=bb, slope=0.2)

    in_specs = [pl.BlockSpec((bb, NETWORK_CHANNELS), lambda i: (i, 0))]
    for op in ops:
        in_specs.append(pl.BlockSpec(op.shape, _const_index_map(op.ndim)))

    out = pl.pallas_call(
        kernel,
        out_shape=jax.ShapeDtypeStruct((b_pad * 16, 128), jnp.float32),
        grid=(nblk,),
        in_specs=in_specs,
        out_specs=pl.BlockSpec((bb * 16, 128), lambda i: (i, 0)),
        compiler_params=pltpu.CompilerParams(
            dimension_semantics=("parallel",),
            vmem_limit_bytes=48 * 1024 * 1024,
        ),
    )(x2, *ops)

    # rows (block, j, b), lanes (q, ow)  ->  (B, 64, 32) with oh = 4j + q
    out = out.reshape(nblk, 16, bb, 4, 32)
    out = jnp.transpose(out, (0, 2, 1, 3, 4)).reshape(b_pad, 64, 32)
    return out[:b]


# ---------------------------------------------------------------------------
# Deterministic parameter init (shapes from Expander.__init__)
# ---------------------------------------------------------------------------
def init_params(key):
    keys = jax.random.split(key, 2 + 2 * len(_CONV_CFGS))
    params = {}
    s = (1.0 / NETWORK_CHANNELS) ** 0.5
    # torch Linear stores (out, in); we store (in, out) so y = x @ W + b
    params["initial_w"] = jax.random.uniform(
        keys[0], (NETWORK_CHANNELS, NETWORK_CHANNELS * 4), jnp.float32, -s, s)
    params["initial_b"] = jax.random.uniform(
        keys[1], (NETWORK_CHANNELS * 4,), jnp.float32, -s, s)
    for i, (cin, cout, kh, kw, _, _, _) in enumerate(_CONV_CFGS):
        sc = (1.0 / (cin * kh * kw)) ** 0.5
        params[f"w{i}"] = jax.random.uniform(
            keys[2 + 2 * i], (cin, cout, kh, kw), jnp.float32, -sc, sc)
        params[f"b{i}"] = jax.random.uniform(
            keys[3 + 2 * i], (cout,), jnp.float32, -sc, sc)
    return params


# ---------------------------------------------------------------------------
# Pure-JAX reference (for correctness check)
# ---------------------------------------------------------------------------
def reference_forward(params, x):
    x = x.reshape(-1, NETWORK_CHANNELS)
    x = x @ params["initial_w"] + params["initial_b"]
    x = x.reshape(-1, NETWORK_CHANNELS, 2, 2)
    for i, (_, _, kh, kw, stride, pad, slope) in enumerate(_CONV_CFGS):
        w_ct, b = params[f"w{i}"], params[f"b{i}"]
        w_conv = jnp.flip(jnp.transpose(w_ct, (1, 0, 2, 3)), axis=(2, 3))
        x = lax.conv_general_dilated(
            x, w_conv, window_strides=(1, 1),
            padding=[(kh - 1 - pad[0], kh - 1 - pad[0]),
                     (kw - 1 - pad[1], kw - 1 - pad[1])],
            lhs_dilation=stride,
            dimension_numbers=("NCHW", "OIHW", "NCHW"),
        ) + b[None, :, None, None]
        if slope is not None:
            x = jnp.where(x > 0, x, slope * x)
    return x.reshape(-1, NETWORK_CHANNELS, 32)


if __name__ == "__main__":
    key = jax.random.PRNGKey(0)
    pkey, xkey, xkey2 = jax.random.split(key, 3)
    params = init_params(pkey)
    ops = prepare_operands(params)

    # Small demo batch (ragged: padded internally to the 8-row batch block).
    batch = 2
    x = jax.random.normal(xkey, (batch, NETWORK_CHANNELS), jnp.float32)
    out = jax.block_until_ready(expander_forward(ops, x))
    assert out.shape == (batch, NETWORK_CHANNELS, 32), out.shape
    ref = reference_forward(params, x)
    np.testing.assert_allclose(np.asarray(out), np.asarray(ref), rtol=2e-2, atol=3e-3)

    # Multi-grid-step + padding path (grid=(3,), parallel over batch blocks).
    batch2 = 20
    x2 = jax.random.normal(xkey2, (batch2, NETWORK_CHANNELS), jnp.float32)
    out2 = jax.block_until_ready(expander_forward(ops, x2, batch_block=8))
    ref2 = reference_forward(params, x2)
    np.testing.assert_allclose(np.asarray(out2), np.asarray(ref2), rtol=2e-2, atol=3e-3)

    print("KERNEL_OK")
</pallas_src>

<mosaic_0001>
module attributes {stable_mosaic.version = 11 : i64} {
  func.func @_expander_kernel(%arg0: i32, %arg1: memref<8x64xf32, #tpu.memory_space<vmem>>, %arg2: memref<64x768xbf16, #tpu.memory_space<vmem>>, %arg3: memref<4x128xf32, #tpu.memory_space<vmem>>, %arg4: memref<3x128x512xbf16, #tpu.memory_space<vmem>>, %arg5: memref<3x1x128xf32, #tpu.memory_space<vmem>>, %arg6: memref<256x128xbf16, #tpu.memory_space<vmem>>, %arg7: memref<256x128xbf16, #tpu.memory_space<vmem>>, %arg8: memref<1x128xf32, #tpu.memory_space<vmem>>, %arg9: memref<128x128xf32, #tpu.memory_space<vmem>>) attributes {dimension_semantics = [#tpu.dimension_semantics<parallel>], iteration_bounds = array<i64: 1>, scalar_prefetch = 0 : i64, scratch_operands = 0 : i64, tpu.core_type = #tpu.core_type<tc>, window_params = [{transform_indices = @transform_0, window_bounds = array<i64: 8, 64>}, {pipeline_mode = #tpu.pipeline_mode<synchronous>, transform_indices = @transform_1, window_bounds = array<i64: 64, 768>}, {pipeline_mode = #tpu.pipeline_mode<synchronous>, transform_indices = @transform_2, window_bounds = array<i64: 4, 128>}, {pipeline_mode = #tpu.pipeline_mode<synchronous>, transform_indices = @transform_3, window_bounds = array<i64: 3, 128, 512>}, {pipeline_mode = #tpu.pipeline_mode<synchronous>, transform_indices = @transform_4, window_bounds = array<i64: 3, 1, 128>}, {pipeline_mode = #tpu.pipeline_mode<synchronous>, transform_indices = @transform_5, window_bounds = array<i64: 256, 128>}, {pipeline_mode = #tpu.pipeline_mode<synchronous>, transform_indices = @transform_6, window_bounds = array<i64: 256, 128>}, {pipeline_mode = #tpu.pipeline_mode<synchronous>, transform_indices = @transform_7, window_bounds = array<i64: 1, 128>}, {transform_indices = @transform_8, window_bounds = array<i64: 128, 128>}]} {
    %cst = arith.constant 0.000000e+00 : f32
    %0 = vector.broadcast %cst : f32 to vector<8x128xf32>
    %c0 = arith.constant 0 : index
    %c0_0 = arith.constant 0 : index
    %1 = vector.load %arg1[%c0, %c0_0] : memref<8x64xf32, #tpu.memory_space<vmem>>, vector<8x64xf32>
    %2 = arith.truncf %1 : vector<8x64xf32> to vector<8x64xbf16>
    %c0_1 = arith.constant 0 : index
    %c0_2 = arith.constant 0 : index
    %3 = vector.load %arg2[%c0_1, %c0_2] : memref<64x768xbf16, #tpu.memory_space<vmem>>, vector<64x768xbf16>
    %cst_3 = arith.constant dense<0.000000e+00> : vector<8x768xf32>
    %4 = tpu.matmul %2, %3, %cst_3 {dimension_numbers = #tpu.dot_dimension_numbers<[1], [0], [0], [1], [0, 0, 1, 1], [], []>} : vector<8x64xbf16>, vector<64x768xbf16>, vector<8x768xf32> -> vector<8x768xf32>
    %c0_4 = arith.constant 0 : index
    %c0_5 = arith.constant 0 : index
    %5 = vector.load %arg3[%c0_4, %c0_5] : memref<4x128xf32, #tpu.memory_space<vmem>>, vector<4x128xf32>
    %6 = vector.extract_strided_slice %4 {offsets = [0, 0], sizes = [8, 128], strides = [1, 1]} : vector<8x768xf32> to vector<8x128xf32>
    %7 = vector.extract_strided_slice %5 {offsets = [0, 0], sizes = [1, 128], strides = [1, 1]} : vector<4x128xf32> to vector<1x128xf32>
    %8 = vector.broadcast %7 : vector<1x128xf32> to vector<8x128xf32>
    %9 = arith.addf %6, %8 : vector<8x128xf32>
    %10 = vector.extract_strided_slice %4 {offsets = [0, 128], sizes = [8, 128], strides = [1, 1]} : vector<8x768xf32> to vector<8x128xf32>
    %11 = vector.extract_strided_slice %4 {offsets = [0, 384], sizes = [8, 128], strides = [1, 1]} : vector<8x768xf32> to vector<8x128xf32>
    %12 = arith.addf %10, %11 : vector<8x128xf32>
    %13 = vector.extract_strided_slice %5 {offsets = [1, 0], sizes = [1, 128], strides = [1, 1]} : vector<4x128xf32> to vector<1x128xf32>
    %14 = vector.broadcast %13 : vector<1x128xf32> to vector<8x128xf32>
    %15 = arith.addf %12, %14 : vector<8x128xf32>
    %16 = vector.extract_strided_slice %4 {offsets = [0, 512], sizes = [8, 128], strides = [1, 1]} : vector<8x768xf32> to vector<8x128xf32>
    %17 = vector.extract_strided_slice %4 {offsets = [0, 256], sizes = [8, 128], strides = [1, 1]} : vector<8x768xf32> to vector<8x128xf32>
    %18 = arith.addf %16, %17 : vector<8x128xf32>
    %19 = vector.extract_strided_slice %5 {offsets = [2, 0], sizes = [1, 128], strides = [1, 1]} : vector<4x128xf32> to vector<1x128xf32>
    %20 = vector.broadcast %19 : vector<1x128xf32> to vector<8x128xf32>
    %21 = arith.addf %18, %20 : vector<8x128xf32>
    %22 = vector.extract_strided_slice %4 {offsets = [0, 640], sizes = [8, 128], strides = [1, 1]} : vector<8x768xf32> to vector<8x128xf32>
    %23 = vector.extract_strided_slice %5 {offsets = [3, 0], sizes = [1, 128], strides = [1, 1]} : vector<4x128xf32> to vector<1x128xf32>
    %24 = vector.broadcast %23 : vector<1x128xf32> to vector<8x128xf32>
    %25 = arith.addf %22, %24 : vector<8x128xf32>
    %26 = tpu.concatenate %9, %15, %21, %25 in 0 : vector<8x128xf32>, vector<8x128xf32>, vector<8x128xf32>, vector<8x128xf32> -> vector<32x128xf32>
    %cst_6 = arith.constant 0.000000e+00 : f32
    %27 = vector.broadcast %cst_6 : f32 to vector<32x128xf32>
    %28 = arith.cmpf ogt, %26, %27 : vector<32x128xf32>
    %cst_7 = arith.constant 2.000000e-01 : f32
    %29 = vector.broadcast %cst_7 : f32 to vector<32x128xf32>
    %30 = arith.mulf %29, %26 : vector<32x128xf32>
    %31 = arith.select %28, %26, %30 : vector<32x128xi1>, vector<32x128xf32>
    %c0_8 = arith.constant 0 : index
    %c0_9 = arith.constant 0 : index
    %c0_10 = arith.constant 0 : index
    %32 = vector.load %arg5[%c0_8, %c0_9, %c0_10] : memref<3x1x128xf32, #tpu.memory_space<vmem>>, vector<1x1x128xf32>
    %33 = vector.shape_cast %32 : vector<1x1x128xf32> to vector<1x128xf32>
    %34 = arith.truncf %31 : vector<32x128xf32> to vector<32x128xbf16>
    %c0_11 = arith.constant 0 : index
    %c0_12 = arith.constant 0 : index
    %c0_13 = arith.constant 0 : index
    %35 = vector.load %arg4[%c0_11, %c0_12, %c0_13] : memref<3x128x512xbf16, #tpu.memory_space<vmem>>, vector<1x128x512xbf16>
    %36 = vector.shape_cast %35 : vector<1x128x512xbf16> to vector<128x512xbf16>
    %cst_14 = arith.constant dense<0.000000e+00> : vector<32x512xf32>
    %37 = tpu.matmul %34, %36, %cst_14 {dimension_numbers = #tpu.dot_dimension_numbers<[1], [0], [0], [1], [0, 0, 1, 1], [], []>} : vector<32x128xbf16>, vector<128x512xbf16>, vector<32x512xf32> -> vector<32x512xf32>
    %38 = vector.extract_strided_slice %37 {offsets = [0, 128], sizes = [32, 128], strides = [1, 1]} : vector<32x512xf32> to vector<32x128xf32>
    %39 = vector.broadcast %33 : vector<1x128xf32> to vector<32x128xf32>
    %40 = arith.addf %38, %39 : vector<32x128xf32>
    %41 = vector.extract_strided_slice %37 {offsets = [0, 384], sizes = [32, 128], strides = [1, 1]} : vector<32x512xf32> to vector<32x128xf32>
    %42 = vector.extract_strided_slice %41 {offsets = [0, 0], sizes = [24, 128], strides = [1, 1]} : vector<32x128xf32> to vector<24x128xf32>
    %43 = tpu.concatenate %0, %42 in 0 : vector<8x128xf32>, vector<24x128xf32> -> vector<32x128xf32>
    %44 = arith.addf %40, %43 : vector<32x128xf32>
    %cst_15 = arith.constant 0.000000e+00 : f32
    %45 = vector.broadcast %cst_15 : f32 to vector<32x128xf32>
    %46 = arith.cmpf ogt, %44, %45 : vector<32x128xf32>
    %cst_16 = arith.constant 2.000000e-01 : f32
    %47 = vector.broadcast %cst_16 : f32 to vector<32x128xf32>
    %48 = arith.mulf %47, %44 : vector<32x128xf32>
    %49 = arith.select %46, %44, %48 : vector<32x128xi1>, vector<32x128xf32>
    %50 = vector.extract_strided_slice %37 {offsets = [0, 256], sizes = [32, 128], strides = [1, 1]} : vector<32x512xf32> to vector<32x128xf32>
    %51 = vector.broadcast %33 : vector<1x128xf32> to vector<32x128xf32>
    %52 = arith.addf %50, %51 : vector<32x128xf32>
    %53 = vector.extract_strided_slice %37 {offsets = [0, 0], sizes = [32, 128], strides = [1, 1]} : vector<32x512xf32> to vector<32x128xf32>
    %54 = vector.extract_strided_slice %53 {offsets = [8, 0], sizes = [24, 128], strides = [1, 1]} : vector<32x128xf32> to vector<24x128xf32>
    %55 = tpu.concatenate %54, %0 in 0 : vector<24x128xf32>, vector<8x128xf32> -> vector<32x128xf32>
    %56 = arith.addf %52, %55 : vector<32x128xf32>
    %cst_17 = arith.constant 0.000000e+00 : f32
    %57 = vector.broadcast %cst_17 : f32 to vector<32x128xf32>
    %58 = arith.cmpf ogt, %56, %57 : vector<32x128xf32>
    %cst_18 = arith.constant 2.000000e-01 : f32
    %59 = vector.broadcast %cst_18 : f32 to vector<32x128xf32>
    %60 = arith.mulf %59, %56 : vector<32x128xf32>
    %61 = arith.select %58, %56, %60 : vector<32x128xi1>, vector<32x128xf32>
    %62 = vector.extract_strided_slice %49 {offsets = [0, 0], sizes = [8, 128], strides = [1, 1]} : vector<32x128xf32> to vector<8x128xf32>
    %63 = vector.extract_strided_slice %61 {offsets = [0, 0], sizes = [8, 128], strides = [1, 1]} : vector<32x128xf32> to vector<8x128xf32>
    %64 = vector.extract_strided_slice %49 {offsets = [8, 0], sizes = [8, 128], strides = [1, 1]} : vector<32x128xf32> to vector<8x128xf32>
    %65 = vector.extract_strided_slice %61 {offsets = [8, 0], sizes = [8, 128], strides = [1, 1]} : vector<32x128xf32> to vector<8x128xf32>
    %66 = vector.extract_strided_slice %49 {offsets = [16, 0], sizes = [8, 128], strides = [1, 1]} : vector<32x128xf32> to vector<8x128xf32>
    %67 = vector.extract_strided_slice %61 {offsets = [16, 0], sizes = [8, 128], strides = [1, 1]} : vector<32x128xf32> to vector<8x128xf32>
    %68 = vector.extract_strided_slice %49 {offsets = [24, 0], sizes = [8, 128], strides = [1, 1]} : vector<32x128xf32> to vector<8x128xf32>
    %69 = vector.extract_strided_slice %61 {offsets = [24, 0], sizes = [8, 128], strides = [1, 1]} : vector<32x128xf32> to vector<8x128xf32>
    %70 = tpu.concatenate %62, %63, %64, %65, %66, %67, %68, %69 in 0 : vector<8x128xf32>, vector<8x128xf32>, vector<8x128xf32>, vector<8x128xf32>, vector<8x128xf32>, vector<8x128xf32>, vector<8x128xf32>, vector<8x128xf32> -> vector<64x128xf32>
    %c1 = arith.constant 1 : index
    %c0_19 = arith.constant 0 : index
    %c0_20 = arith.constant 0 : index
    %71 = vector.load %arg5[%c1, %c0_19, %c0_20] : memref<3x1x128xf32, #tpu.memory_space<vmem>>, vector<1x1x128xf32>
    %72 = vector.shape_cast %71 : vector<1x1x128xf32> to vector<1x128xf32>
    %73 = arith.truncf %70 : vector<64x128xf32> to vector<64x128xbf16>
    %c1_21 = arith.constant 1 : index
    %c0_22 = arith.constant 0 : index
    %c0_23 = arith.constant 0 : index
    %74 = vector.load %arg4[%c1_21, %c0_22, %c0_23] : memref<3x128x512xbf16, #tpu.memory_space<vmem>>, vector<1x128x512xbf16>
    %75 = vector.shape_cast %74 : vector<1x128x512xbf16> to vector<128x512xbf16>
    %cst_24 = arith.constant dense<0.000000e+00> : vector<64x512xf32>
    %76 = tpu.matmul %73, %75, %cst_24 {dimension_numbers = #tpu.dot_dimension_numbers<[1], [0], [0], [1], [0, 0, 1, 1], [], []>} : vector<64x128xbf16>, vector<128x512xbf16>, vector<64x512xf32> -> vector<64x512xf32>
    %77 = vector.extract_strided_slice %76 {offsets = [0, 128], sizes = [64, 128], strides = [1, 1]} : vector<64x512xf32> to vector<64x128xf32>
    %78 = vector.broadcast %72 : vector<1x128xf32> to vector<64x128xf32>
    %79 = arith.addf %77, %78 : vector<64x128xf32>
    %80 = vector.extract_strided_slice %76 {offsets = [0, 384], sizes = [64, 128], strides = [1, 1]} : vector<64x512xf32> to vector<64x128xf32>
    %81 = vector.extract_strided_slice %80 {offsets = [0, 0], sizes = [56, 128], strides = [1, 1]} : vector<64x128xf32> to vector<56x128xf32>
    %82 = tpu.concatenate %0, %81 in 0 : vector<8x128xf32>, vector<56x128xf32> -> vector<64x128xf32>
    %83 = arith.addf %79, %82 : vector<64x128xf32>
    %cst_25 = arith.constant 0.000000e+00 : f32
    %84 = vector.broadcast %cst_25 : f32 to vector<64x128xf32>
    %85 = arith.cmpf ogt, %83, %84 : vector<64x128xf32>
    %cst_26 = arith.constant 2.000000e-01 : f32
    %86 = vector.broadcast %cst_26 : f32 to vector<64x128xf32>
    %87 = arith.mulf %86, %83 : vector<64x128xf32>
    %88 = arith.select %85, %83, %87 : vector<64x128xi1>, vector<64x128xf32>
    %89 = vector.extract_strided_slice %76 {offsets = [0, 256], sizes = [64, 128], strides = [1, 1]} : vector<64x512xf32> to vector<64x128xf32>
    %90 = vector.broadcast %72 : vector<1x128xf32> to vector<64x128xf32>
    %91 = arith.addf %89, %90 : vector<64x128xf32>
    %92 = vector.extract_strided_slice %76 {offsets = [0, 0], sizes = [64, 128], strides = [1, 1]} : vector<64x512xf32> to vector<64x128xf32>
    %93 = vector.extract_strided_slice %92 {offsets = [8, 0], sizes = [56, 128], strides = [1, 1]} : vector<64x128xf32> to vector<56x128xf32>
    %94 = tpu.concatenate %93, %0 in 0 : vector<56x128xf32>, vector<8x128xf32> -> vector<64x128xf32>
    %95 = arith.addf %91, %94 : vector<64x128xf32>
    %cst_27 = arith.constant 0.000000e+00 : f32
    %96 = vector.broadcast %cst_27 : f32 to vector<64x128xf32>
    %97 = arith.cmpf ogt, %95, %96 : vector<64x128xf32>
    %cst_28 = arith.constant 2.000000e-01 : f32
    %98 = vector.broadcast %cst_28 : f32 to vector<64x128xf32>
    %99 = arith.mulf %98, %95 : vector<64x128xf32>
    %100 = arith.select %97, %95, %99 : vector<64x128xi1>, vector<64x128xf32>
    %101 = vector.extract_strided_slice %88 {offsets = [0, 0], sizes = [8, 128], strides = [1, 1]} : vector<64x128xf32> to vector<8x128xf32>
    %102 = vector.extract_strided_slice %100 {offsets = [0, 0], sizes = [8, 128], strides = [1, 1]} : vector<64x128xf32> to vector<8x128xf32>
    %103 = vector.extract_strided_slice %88 {offsets = [8, 0], sizes = [8, 128], strides = [1, 1]} : vector<64x128xf32> to vector<8x128xf32>
    %104 = vector.extract_strided_slice %100 {offsets = [8, 0], sizes = [8, 128], strides = [1, 1]} : vector<64x128xf32> to vector<8x128xf32>
    %105 = vector.extract_strided_slice %88 {offsets = [16, 0], sizes = [8, 128], strides = [1, 1]} : vector<64x128xf32> to vector<8x128xf32>
    %106 = vector.extract_strided_slice %100 {offsets = [16, 0], sizes = [8, 128], strides = [1, 1]} : vector<64x128xf32> to vector<8x128xf32>
    %107 = vector.extract_strided_slice %88 {offsets = [24, 0], sizes = [8, 128], strides = [1, 1]} : vector<64x128xf32> to vector<8x128xf32>
    %108 = vector.extract_strided_slice %100 {offsets = [24, 0], sizes = [8, 128], strides = [1, 1]} : vector<64x128xf32> to vector<8x128xf32>
    %109 = vector.extract_strided_slice %88 {offsets = [32, 0], sizes = [8, 128], strides = [1, 1]} : vector<64x128xf32> to vector<8x128xf32>
    %110 = vector.extract_strided_slice %100 {offsets = [32, 0], sizes = [8, 128], strides = [1, 1]} : vector<64x128xf32> to vector<8x128xf32>
    %111 = vector.extract_strided_slice %88 {offsets = [40, 0], sizes = [8, 128], strides = [1, 1]} : vector<64x128xf32> to vector<8x128xf32>
    %112 = vector.extract_strided_slice %100 {offsets = [40, 0], sizes = [8, 128], strides = [1, 1]} : vector<64x128xf32> to vector<8x128xf32>
    %113 = vector.extract_strided_slice %88 {offsets = [48, 0], sizes = [8, 128], strides = [1, 1]} : vector<64x128xf32> to vector<8x128xf32>
    %114 = vector.extract_strided_slice %100 {offsets = [48, 0], sizes = [8, 128], strides = [1, 1]} : vector<64x128xf32> to vector<8x128xf32>
    %115 = vector.extract_strided_slice %88 {offsets = [56, 0], sizes = [8, 128], strides = [1, 1]} : vector<64x128xf32> to vector<8x128xf32>
    %116 = vector.extract_strided_slice %100 {offsets = [56, 0], sizes = [8, 128], strides = [1, 1]} : vector<64x128xf32> to vector<8x128xf32>
    %117 = tpu.concatenate %101, %102, %103, %104, %105, %106, %107, %108, %109, %110, %111, %112, %113, %114, %115, %116 in 0 : vector<8x128xf32>, vector<8x128xf32>, vector<8x128xf32>, vector<8x128xf32>, vector<8x128xf32>, vector<8x128xf32>, vector<8x128xf32>, vector<8x128xf32>, vector<8x128xf32>, vector<8x128xf32>, vector<8x128xf32>, vector<8x128xf32>, vector<8x128xf32>, vector<8x128xf32>, vector<8x128xf32>, vector<8x128xf32> -> vector<128x128xf32>
    %c2 = arith.constant 2 : index
    %c0_29 = arith.constant 0 : index
    %c0_30 = arith.constant 0 : index
    %118 = vector.load %arg5[%c2, %c0_29, %c0_30] : memref<3x1x128xf32, #tpu.memory_space<vmem>>, vector<1x1x128xf32>
    %119 = vector.shape_cast %118 : vector<1x1x128xf32> to vector<1x128xf32>
    %120 = arith.truncf %117 : vector<128x128xf32> to vector<128x128xbf16>
    %c2_31 = arith.constant 2 : index
    %c0_32 = arith.constant 0 : index
    %c0_33 = arith.constant 0 : index
    %121 = vector.load %arg4[%c2_31, %c0_32, %c0_33] : memref<3x128x512xbf16, #tpu.memory_space<vmem>>, vector<1x128x512xbf16>
    %122 = vector.shape_cast %121 : vector<1x128x512xbf16> to vector<128x512xbf16>
    %cst_34 = arith.constant dense<0.000000e+00> : vector<128x512xf32>
    %123 = tpu.matmul %120, %122, %cst_34 {dimension_numbers = #tpu.dot_dimension_numbers<[1], [0], [0], [1], [0, 0, 1, 1], [], []>} : vector<128x128xbf16>, vector<128x512xbf16>, vector<128x512xf32> -> vector<128x512xf32>
    %124 = vector.extract_strided_slice %123 {offsets = [0, 128], sizes = [128, 128], strides = [1, 1]} : vector<128x512xf32> to vector<128x128xf32>
    %125 = vector.broadcast %119 : vector<1x128xf32> to vector<128x128xf32>
    %126 = arith.addf %124, %125 : vector<128x128xf32>
    %127 = vector.extract_strided_slice %123 {offsets = [0, 384], sizes = [128, 128], strides = [1, 1]} : vector<128x512xf32> to vector<128x128xf32>
    %128 = vector.extract_strided_slice %127 {offsets = [0, 0], sizes = [120, 128], strides = [1, 1]} : vector<128x128xf32> to vector<120x128xf32>
    %129 = tpu.concatenate %0, %128 in 0 : vector<8x128xf32>, vector<120x128xf32> -> vector<128x128xf32>
    %130 = arith.addf %126, %129 : vector<128x128xf32>
    %cst_35 = arith.constant 0.000000e+00 : f32
    %131 = vector.broadcast %cst_35 : f32 to vector<128x128xf32>
    %132 = arith.cmpf ogt, %130, %131 : vector<128x128xf32>
    %cst_36 = arith.constant 2.000000e-01 : f32
    %133 = vector.broadcast %cst_36 : f32 to vector<128x128xf32>
    %134 = arith.mulf %133, %130 : vector<128x128xf32>
    %135 = arith.select %132, %130, %134 : vector<128x128xi1>, vector<128x128xf32>
    %136 = vector.extract_strided_slice %123 {offsets = [0, 256], sizes = [128, 128], strides = [1, 1]} : vector<128x512xf32> to vector<128x128xf32>
    %137 = vector.broadcast %119 : vector<1x128xf32> to vector<128x128xf32>
    %138 = arith.addf %136, %137 : vector<128x128xf32>
    %139 = vector.extract_strided_slice %123 {offsets = [0, 0], sizes = [128, 128], strides = [1, 1]} : vector<128x512xf32> to vector<128x128xf32>
    %140 = vector.extract_strided_slice %139 {offsets = [8, 0], sizes = [120, 128], strides = [1, 1]} : vector<128x128xf32> to vector<120x128xf32>
    %141 = tpu.concatenate %140, %0 in 0 : vector<120x128xf32>, vector<8x128xf32> -> vector<128x128xf32>
    %142 = arith.addf %138, %141 : vector<128x128xf32>
    %cst_37 = arith.constant 0.000000e+00 : f32
    %143 = vector.broadcast %cst_37 : f32 to vector<128x128xf32>
    %144 = arith.cmpf ogt, %142, %143 : vector<128x128xf32>
    %cst_38 = arith.constant 2.000000e-01 : f32
    %145 = vector.broadcast %cst_38 : f32 to vector<128x128xf32>
    %146 = arith.mulf %145, %142 : vector<128x128xf32>
    %147 = arith.select %144, %142, %146 : vector<128x128xi1>, vector<128x128xf32>
    %148 = tpu.concatenate %135, %147 in 1 : vector<128x128xf32>, vector<128x128xf32> -> vector<128x256xf32>
    %149 = vector.extract_strided_slice %148 {offsets = [0, 0], sizes = [128, 128], strides = [1, 1]} : vector<128x256xf32> to vector<128x128xf32>
    %150 = vector.extract_strided_slice %149 {offsets = [8, 0], sizes = [120, 128], strides = [1, 1]} : vector<128x128xf32> to vector<120x128xf32>
    %151 = tpu.concatenate %150, %0 in 0 : vector<120x128xf32>, vector<8x128xf32> -> vector<128x128xf32>
    %152 = vector.extract_strided_slice %148 {offsets = [0, 128], sizes = [128, 128], strides = [1, 1]} : vector<128x256xf32> to vector<128x128xf32>
    %153 = vector.extract_strided_slice %152 {offsets = [0, 0], sizes = [120, 128], strides = [1, 1]} : vector<128x128xf32> to vector<120x128xf32>
    %154 = tpu.concatenate %0, %153 in 0 : vector<8x128xf32>, vector<120x128xf32> -> vector<128x128xf32>
    %155 = tpu.concatenate %151, %154 in 1 : vector<128x128xf32>, vector<128x128xf32> -> vector<128x256xf32>
    %156 = arith.truncf %148 : vector<128x256xf32> to vector<128x256xbf16>
    %c0_39 = arith.constant 0 : index
    %c0_40 = arith.constant 0 : index
    %157 = vector.load %arg6[%c0_39, %c0_40] : memref<256x128xbf16, #tpu.memory_space<vmem>>, vector<256x128xbf16>
    %cst_41 = arith.constant dense<0.000000e+00> : vector<128x128xf32>
    %158 = tpu.matmul %156, %157, %cst_41 {dimension_numbers = #tpu.dot_dimension_numbers<[1], [0], [0], [1], [0, 0, 1, 1], [], []>} : vector<128x256xbf16>, vector<256x128xbf16>, vector<128x128xf32> -> vector<128x128xf32>
    %159 = arith.truncf %155 : vector<128x256xf32> to vector<128x256xbf16>
    %c0_42 = arith.constant 0 : index
    %c0_43 = arith.constant 0 : index
    %160 = vector.load %arg7[%c0_42, %c0_43] : memref<256x128xbf16, #tpu.memory_space<vmem>>, vector<256x128xbf16>
    %cst_44 = arith.constant dense<0.000000e+00> : vector<128x128xf32>
    %161 = tpu.matmul %159, %160, %cst_44 {dimension_numbers = #tpu.dot_dimension_numbers<[1], [0], [0], [1], [0, 0, 1, 1], [], []>} : vector<128x256xbf16>, vector<256x128xbf16>, vector<128x128xf32> -> vector<128x128xf32>
    %162 = arith.addf %158, %161 : vector<128x128xf32>
    %c0_45 = arith.constant 0 : index
    %c0_46 = arith.constant 0 : index
    %163 = vector.load %arg8[%c0_45, %c0_46] : memref<1x128xf32, #tpu.memory_space<vmem>>, vector<1x128xf32>
    %164 = vector.broadcast %163 : vector<1x128xf32> to vector<128x128xf32>
    %165 = arith.addf %162, %164 : vector<128x128xf32>
    %c0_47 = arith.constant 0 : index
    %c0_48 = arith.constant 0 : index
    %166 = vector.load %arg9[%c0_47, %c0_48] : memref<128x128xf32, #tpu.memory_space<vmem>>, vector<128x128xf32>
    tpu.vector_store %arg9[%c0_47, %c0_48], %165 {strides = array<i32>} : memref<128x128xf32, #tpu.memory_space<vmem>>, vector<128x128xf32>,
    return
  }
  func.func @transform_0(%arg0: i32) -> (i32, i32) {
    %c0_i32 = arith.constant 0 : i32
    %c0_i32_0 = arith.constant 0 : i32
    return %arg0, %c0_i32 : i32, i32
  }
  func.func @transform_1(%arg0: i32) -> (i32, i32) {
    %c0_i32 = arith.constant 0 : i32
    %c0_i32_0 = arith.constant 0 : i32
    %c0_i32_1 = arith.constant 0 : i32
    return %c0_i32, %c0_i32_0 : i32, i32
  }
  func.func @transform_2(%arg0: i32) -> (i32, i32) {
    %c0_i32 = arith.constant 0 : i32
    %c0_i32_0 = arith.constant 0 : i32
    %c0_i32_1 = arith.constant 0 : i32
    return %c0_i32, %c0_i32_0 : i32, i32
  }
  func.func @transform_3(%arg0: i32) -> (i32, i32, i32) {
    %c0_i32 = arith.constant 0 : i32
    %c0_i32_0 = arith.constant 0 : i32
    %c0_i32_1 = arith.constant 0 : i32
    %c0_i32_2 = arith.constant 0 : i32
    return %c0_i32, %c0_i32_0, %c0_i32_1 : i32, i32, i32
  }
  func.func @transform_4(%arg0: i32) -> (i32, i32, i32) {
    %c0_i32 = arith.constant 0 : i32
    %c0_i32_0 = arith.constant 0 : i32
    %c0_i32_1 = arith.constant 0 : i32
    %c0_i32_2 = arith.constant 0 : i32
    return %c0_i32, %c0_i32_0, %c0_i32_1 : i32, i32, i32
  }
  func.func @transform_5(%arg0: i32) -> (i32, i32) {
    %c0_i32 = arith.constant 0 : i32
    %c0_i32_0 = arith.constant 0 : i32
    %c0_i32_1 = arith.constant 0 : i32
    return %c0_i32, %c0_i32_0 : i32, i32
  }
  func.func @transform_6(%arg0: i32) -> (i32, i32) {
    %c0_i32 = arith.constant 0 : i32
    %c0_i32_0 = arith.constant 0 : i32
    %c0_i32_1 = arith.constant 0 : i32
    return %c0_i32, %c0_i32_0 : i32, i32
  }
  func.func @transform_7(%arg0: i32) -> (i32, i32) {
    %c0_i32 = arith.constant 0 : i32
    %c0_i32_0 = arith.constant 0 : i32
    %c0_i32_1 = arith.constant 0 : i32
    return %c0_i32, %c0_i32_0 : i32, i32
  }
  func.func @transform_8(%arg0: i32) -> (i32, i32) {
    %c0_i32 = arith.constant 0 : i32
    %c0_i32_0 = arith.constant 0 : i32
    return %arg0, %c0_i32 : i32, i32
  }
}

</mosaic_0001>

<bundles_post_ra>
// kernel: tpu_custom_call.1
= control target key start
LH: loop header
LB: loop body
LE: loop exit
PB: predicated region body
PF: predicated region fallthrough
CT: control target
= control target key end

     0   :  { %13 = vsyncpa [#allocation3], 0  ;;  %s3338_s0 = inlined_call_operand.hbm [shape: f32[8,64], index: 0, kind: input, shape index: {}]   ;;  %s3339_s1 = inlined_call_operand.hbm [shape: bf16[64,768], index: 1, kind: input, shape index: {}]   ;;  %s3340_s2 = inlined_call_operand.vmem [shape: f32[4,128], index: 2, kind: input, shape index: {}]   ;;  %s3341_s3 = inlined_call_operand.hbm [shape: bf16[3,128,512], index: 3, kind: input, shape index: {}]   ;;  %s3342_s4 = inlined_call_operand.vmem [shape: f32[3,1,128], index: 4, kind: input, shape index: {}]   ;;  %s3343_s5 = inlined_call_operand.hbm [shape: bf16[256,128], index: 5, kind: input, shape index: {}]   ;;  %s3344_s6 = inlined_call_operand.hbm [shape: bf16[256,128], index: 6, kind: input, shape index: {}]   ;;  %s3345_s7 = inlined_call_operand.vmem [shape: f32[1,128], index: 7, kind: input, shape index: {}]   ;;  %s3346_s8 = inlined_call_operand.hbm [shape: f32[128,128], index: 8, kind: output, shape index: {}]  }
   0x1   :  { %14 = vsyncpa [#allocation6], 0 }
   0x2   :  { %15 = vsyncpa [#allocation9], 0 }
   0x3   :  { %16 = vsyncpa [#allocation4], 0  ;;  %s2985_s27 = smov [#allocation5]   ;;  %s2845_s9 = scalar_lea.hbm %s3339_s1, 3072 }
   0x4   :  { %s32_s28 = sshll.u32 %s2985_s27, 4  ;;  %p2846_p0 = scmp.ne.s32.totalorder %s3339_s1, %s2845_s9  ;;  %s33_s28 = int_to_ptr.vmem [resolvable:$true] %s32_s28 }
   0x5   :  { %p2849_p1 = scmp.lt.u32.totalorder %s2845_s9, %s3339_s1 }
   0x7   :  { %p2851_p2 = pnand %p2849_p1, %p2846_p0 }
   0x9   :  { %2854 = shalt.err (!%p2851_p2)
}
   0xa   :  { %s2855_s14 = scalar_lea.vmem %s33_s28, 3072  ;;  %p2860_p4 = scmp.lt.s32.totalorder %s33_s28, %s33_s28 }
   0xb   :  { %p2856_p3 = scmp.ne.s32.totalorder %s33_s28, %s2855_s14  ;;  %p2861_p5 = scmp.lt.s32.totalorder %s2855_s14, %s2855_s14 }
   0xd   :  { %p2862_p6 = por %p2861_p5, %p2860_p4 }
   0xf   :  { %p2863_p7 = pnand %p2862_p6, %p2856_p3 }
  0x11   :  { %2866 = shalt.err (!%p2863_p7)
}
  0x12   :  { %s2986_s15 = smov 384   ;;  %s2987_s16 = smov 24  }
  0x13   :  { %38 = dma.hbm_to_vmem [thread:$0]  %s3339_s1, 3072, %s33_s28, [#allocation6], %s2986_s15, %s2986_s15, %s2987_s16  }
  0x14   :  { %s2988_s19 = smov [#allocation8]   ;;  %s2867_s23 = scalar_lea.hbm %s3343_s5, 2048 }
  0x15   :  { %s60_s20 = sshll.u32 %s2988_s19, 4  ;;  %p2868_p8 = scmp.ne.s32.totalorder %s3343_s5, %s2867_s23  ;;  %s61_s20 = int_to_ptr.vmem [resolvable:$true] %s60_s20 }
  0x16   :  { %p2871_p9 = scmp.lt.u32.totalorder %s2867_s23, %s3343_s5 }
  0x18   :  { %p2873_p10 = pnand %p2871_p9, %p2868_p8 }
  0x1a   :  { %2876 = shalt.err (!%p2873_p10)
}
  0x1b   :  { %s2877_s29 = scalar_lea.vmem %s61_s20, 2048  ;;  %p2882_p12 = scmp.lt.s32.totalorder %s61_s20, %s61_s20 }
  0x1c   :  { %p2878_p11 = scmp.ne.s32.totalorder %s61_s20, %s2877_s29  ;;  %p2883_p13 = scmp.lt.s32.totalorder %s2877_s29, %s2877_s29 }
  0x1e   :  { %p2884_p0 = por %p2883_p13, %p2882_p12 }
  0x20   :  { %p2885_p1 = pnand %p2884_p0, %p2878_p11 }
  0x22   :  { %2888 = shalt.err (!%p2885_p1)
}
  0x23   :  { %s2989_s1 = smov 64   ;;  %s2990_s28 = smov 4  }
  0x24   :  { %66 = dma.hbm_to_vmem [thread:$0]  %s3343_s5, 2048, %s61_s20, [#allocation9], %s2989_s1, %s2989_s1, %s2990_s28  }
  0x25   :  { %s2991_s10 = smov [#allocation2]   ;;  %s2992_s12 = smov [#allocation7]  }
  0x26   :  { %s23_s11 = sshll.u32 %s2991_s10, 4  ;;  %s46_s13 = sshll.u32 %s2992_s12, 4  ;;  %s24_s11 = int_to_ptr.vmem [resolvable:$true] %s23_s11  ;;  %s3073_s13 = int_to_ptr.vmem [resolvable:$true] %s46_s13 }
  0x27   :  { %s2889_s16 = scalar_lea.hbm %s3338_s0, 128 }
  0x28   :  { %p2890_p2 = scmp.ne.s32.totalorder %s3338_s0, %s2889_s16  ;;  %p2893_p3 = scmp.lt.u32.totalorder %s2889_s16, %s3338_s0 }
  0x2a   :  { %p2895_p4 = pnand %p2893_p3, %p2890_p2 }
  0x2c   :  { %2898 = shalt.err (!%p2895_p4)
}
  0x2d   :  { %s2899_s5 = scalar_lea.vmem %s24_s11, 128  ;;  %p2904_p6 = scmp.lt.s32.totalorder %s24_s11, %s24_s11 }
  0x2e   :  { %p2900_p5 = scmp.ne.s32.totalorder %s24_s11, %s2899_s5  ;;  %p2905_p7 = scmp.lt.s32.totalorder %s2899_s5, %s2899_s5 }
  0x30   :  { %p2906_p8 = por %p2905_p7, %p2904_p6 }
  0x32   :  { %p2907_p9 = pnand %p2906_p8, %p2900_p5 }
  0x34   :  { %2910 = shalt.err (!%p2907_p9)
}
  0x35   :  { %26 = dma.hbm_to_vmem [thread:$0]  %s3338_s0, 128, %s24_s11, [#allocation3]  }
  0x36   :  { %s2911_s25 = scalar_lea.hbm %s3341_s3, 12288 }
  0x37   :  { %p2912_p10 = scmp.ne.s32.totalorder %s3341_s3, %s2911_s25  ;;  %p2915_p11 = scmp.lt.u32.totalorder %s2911_s25, %s3341_s3 }
  0x39   :  { %p2917_p12 = pnand %p2915_p11, %p2912_p10 }
  0x3b   :  { %2920 = shalt.err (!%p2917_p12)
}
  0x3c   :  { %s2921_s9 = scalar_lea.vmem %s3073_s13, 12288  ;;  %p2926_p0 = scmp.lt.s32.totalorder %s3073_s13, %s3073_s13 }
  0x3d   :  { %p2922_p13 = scmp.ne.s32.totalorder %s3073_s13, %s2921_s9  ;;  %p2927_p1 = scmp.lt.s32.totalorder %s2921_s9, %s2921_s9 }
  0x3f   :  { %p2928_p2 = por %p2927_p1, %p2926_p0 }
  0x41   :  { %p2929_p3 = pnand %p2928_p2, %p2922_p13 }
  0x43   :  { %2932 = shalt.err (!%p2929_p3)
}
  0x44   :  { %s2993_s0 = smov 256   ;;  %s2994_s10 = smov 16  }
  0x45   :  { %52 = dma.hbm_to_vmem [thread:$0]  %s3341_s3, 12288, %s3073_s13, [#allocation6], %s2993_s0, %s2993_s0, %s2994_s10  }
  0x46   :  { %s2995_s14 = smov [#allocation10]   ;;  %s2933_s18 = scalar_lea.hbm %s3344_s6, 2048 }
  0x47   :  { %s72_s15 = sshll.u32 %s2995_s14, 4  ;;  %p2934_p4 = scmp.ne.s32.totalorder %s3344_s6, %s2933_s18  ;;  %s73_s15 = int_to_ptr.vmem [resolvable:$true] %s72_s15 }
  0x48   :  { %p2937_p5 = scmp.lt.u32.totalorder %s2933_s18, %s3344_s6 }
  0x4a   :  { %p2939_p6 = pnand %p2937_p5, %p2934_p4 }
  0x4c   :  { %2942 = shalt.err (!%p2939_p6)
}
  0x4d   :  { %s2943_s22 = scalar_lea.vmem %s73_s15, 2048  ;;  %p2948_p8 = scmp.lt.s32.totalorder %s73_s15, %s73_s15 }
  0x4e   :  { %p2944_p7 = scmp.ne.s32.totalorder %s73_s15, %s2943_s22  ;;  %p2949_p9 = scmp.lt.s32.totalorder %s2943_s22, %s2943_s22 }
  0x50   :  { %p2950_p10 = por %p2949_p9, %p2948_p8 }
  0x52   :  { %p2951_p11 = pnand %p2950_p10, %p2944_p7 }
  0x54   :  { %2954 = shalt.err (!%p2951_p11)
}
  0x55   :  { %78 = dma.hbm_to_vmem [thread:$0]  %s3344_s6, 2048, %s73_s15, [#allocation9], %s2989_s1, %s2989_s1, %s2990_s28  }
  0x56   :  { %2977 = dma.done.wait [#allocation3], 128  }
  0x57   :  { %2978 = vsyncadd [#allocation3], 4294967168 }
  0x58   :  { %2979 = dma.done.wait [#allocation6], 15360  }
  0x59   :  { %2980 = vsyncadd [#allocation6], 4294951936 }
  0x5a   :  { %2981 = dma.done.wait [#allocation9], 4096  }
  0x5b   :  { %2982 = vsyncadd [#allocation9], 4294963200  ;;  %v2996_v0 = vmov 0   ;;  %v2633_v1 = vld [vmem:[#allocation5 + $0x4] ss:$24 sps:$4 sm:$0xff]   ;;  %vm243_vm0 = vcmask 523264   ;;  %v371_v61 = vlaneseq }
  0x5c   :  { %279 = vmatprep.mubr.bf16.mxu0 %v2996_v0  ;;  %320 = vmatprep.mubr.bf16.mxu1 %v2996_v0  ;;  %v2635_v2 = vld [vmem:[#allocation5 + $0xc] ss:$24 sps:$4 sm:$0xff]   ;;  %v2637_v3 = vld [vmem:[#allocation5] ss:$24 sps:$4 sm:$0xff]   ;;  %v2641_v6 = vld [vmem:[#allocation5 + $0x3c] ss:$24 sps:$4 sm:$0xff]  }
  0x5d   :  { %247 = vmatprep.subr.bf16.mxu0 %v2633_v1  ;;  %v2638_v4 = vld [vmem:[#allocation5 + $0x8] ss:$24 sps:$4 sm:$0xff]   ;;  %288 = vmatprep.subr.bf16.mxu1 %v2635_v2  ;;  %v2639_v5 = vld [vmem:[#allocation5 + $0x34] ss:$24 sps:$4 sm:$0xff]   ;;  %v2644_v8 = vld [vmem:[#allocation5 + $0x38] ss:$24 sps:$4 sm:$0xff]  }
  0x5e   :  { %248 = vmatpush1.bf16.msra.mxu0 %v2637_v3  ;;  %289 = vmatpush1.bf16.msra.mxu1 %v2638_v4  ;;  %v2643_v7 = vld [vmem:[#allocation5 + $0x30] ss:$24 sps:$4 sm:$0xff]   ;;  %v2645_v9 = vld [vmem:[#allocation5 + $0x64] ss:$24 sps:$4 sm:$0xff]   ;;  %v2649_v11 = vld [vmem:[#allocation5 + $0x60] ss:$24 sps:$4 sm:$0xff]  }
  0x5f   :  { %249 = vmatprep.subr.bf16.mxu0 %v2639_v5  ;;  %290 = vmatprep.subr.bf16.mxu1 %v2641_v6  ;;  %v2647_v10 = vld [vmem:[#allocation5 + $0x6c] ss:$24 sps:$4 sm:$0xff]   ;;  %v2650_v12 = vld [vmem:[#allocation5 + $0x68] ss:$24 sps:$4 sm:$0xff]   ;;  %v2653_v14 = vld [vmem:[#allocation5 + $0x9c] ss:$24 sps:$4 sm:$0xff]  }
  0x60   :  { %v2651_v13 = vld [vmem:[#allocation5 + $0x94] ss:$24 sps:$4 sm:$0xff]   ;;  %v2655_v15 = vld [vmem:[#allocation5 + $0x90] ss:$24 sps:$4 sm:$0xff]   ;;  %v97_v17 = vld [vmem:[#allocation2] sm:$0xff]  ;;  %v372_v62 = vshrl.u32 %v371_v61, 7 }
  0x61   :  { %v2656_v16 = vld [vmem:[#allocation5 + $0x98] ss:$24 sps:$4 sm:$0xff]   ;;  %v2659_v18 = vld [vmem:[#allocation5 + $0x14] ss:$24 sps:$4 sm:$0xff]   ;;  %v98_v19 = vpack.c.bf16 %v97_v17, %v97_v17  ;;  %v2662_v21 = vld [vmem:[#allocation5 + $0x44] ss:$24 sps:$4 sm:$0xff]  }
  0x62   :  { %250 = vmatpush1.bf16.msra.mxu0 %v2643_v7  ;;  %291 = vmatpush1.bf16.msra.mxu1 %v2644_v8  ;;  %v2657_v20 = vld [vmem:[#allocation5 + $0x10] ss:$24 sps:$4 sm:$0xff]   ;;  %v2671_v22 = vld [vmem:[#allocation7 + $0x4] ss:$16 sps:$4 sm:$0xff]   ;;  %v2660_v24 = vld [vmem:[#allocation5 + $0x40] ss:$24 sps:$4 sm:$0xff]  }
  0x63   :  { %251 = vmatprep.subr.bf16.mxu0 %v2645_v9  ;;  %292 = vmatprep.subr.bf16.mxu1 %v2647_v10  ;;  %v2669_v23 = vld [vmem:[#allocation7] ss:$16 sps:$4 sm:$0xff]   ;;  %v2677_v25 = vld [vmem:[#allocation7 + $0x24] ss:$16 sps:$4 sm:$0xff]   ;;  %v2674_v34 = vld [vmem:[#allocation7 + $0xc] ss:$16 sps:$4 sm:$0xff]  }
  0x64   :  { %v2665_v26 = vld [vmem:[#allocation5 + $0x74] ss:$24 sps:$4 sm:$0xff]   ;;  %v2675_v27 = vld [vmem:[#allocation7 + $0x20] ss:$16 sps:$4 sm:$0xff]   ;;  %v2668_v30 = vld [vmem:[#allocation5 + $0xa4] ss:$24 sps:$4 sm:$0xff]  }
  0x65   :  { %v2683_v28 = vld [vmem:[#allocation7 + $0x44] ss:$16 sps:$4 sm:$0xff]   ;;  %v2663_v29 = vld [vmem:[#allocation5 + $0x70] ss:$24 sps:$4 sm:$0xff]   ;;  %v2666_v33 = vld [vmem:[#allocation5 + $0xa0] ss:$24 sps:$4 sm:$0xff]  }
  0x66   :  { %252 = vmatpush1.bf16.msra.mxu0 %v2649_v11  ;;  %293 = vmatpush1.bf16.msra.mxu1 %v2650_v12  ;;  %v2681_v31 = vld [vmem:[#allocation7 + $0x40] ss:$16 sps:$4 sm:$0xff]   ;;  %v2689_v32 = vld [vmem:[#allocation7 + $0x64] ss:$16 sps:$4 sm:$0xff]   ;;  %v2672_v35 = vld [vmem:[#allocation7 + $0x8] ss:$16 sps:$4 sm:$0xff]  }
  0x67   :  { %253 = vmatprep.subr.bf16.mxu0 %v2651_v13  ;;  %294 = vmatprep.subr.bf16.mxu1 %v2653_v14  ;;  %v2687_v36 = vld [vmem:[#allocation7 + $0x60] ss:$16 sps:$4 sm:$0xff]   ;;  %v2680_v37 = vld [vmem:[#allocation7 + $0x2c] ss:$16 sps:$4 sm:$0xff]   ;;  %v2695_v38 = vld [vmem:[#allocation7 + $0x84] ss:$16 sps:$4 sm:$0xff]  }
  0x68   :  { %v2693_v39 = vld [vmem:[#allocation7 + $0x80] ss:$16 sps:$4 sm:$0xff]   ;;  %v2701_v40 = vld [vmem:[#allocation7 + $0xa4] ss:$16 sps:$4 sm:$0xff]   ;;  %v2678_v41 = vld [vmem:[#allocation7 + $0x28] ss:$16 sps:$4 sm:$0xff]  }
  0x69   :  { %v2686_v42 = vld [vmem:[#allocation7 + $0x4c] ss:$16 sps:$4 sm:$0xff]   ;;  %v2699_v43 = vld [vmem:[#allocation7 + $0xa0] ss:$16 sps:$4 sm:$0xff]   ;;  %v2684_v44 = vld [vmem:[#allocation7 + $0x48] ss:$16 sps:$4 sm:$0xff]  }
  0x6a   :  { %254 = vmatpush1.bf16.msra.mxu0 %v2655_v15  ;;  %295 = vmatpush1.bf16.msra.mxu1 %v2656_v16  ;;  %v2692_v45 = vld [vmem:[#allocation7 + $0x6c] ss:$16 sps:$4 sm:$0xff]   ;;  %v2690_v46 = vld [vmem:[#allocation7 + $0x68] ss:$16 sps:$4 sm:$0xff]   ;;  %v2707_v51 = vld [vmem:[#allocation7 + $0xc4] ss:$16 sps:$4 sm:$0xff]  }
  0x6b   :  { %329 = vmatprep.subr.bf16.mxu0 %v2659_v18  ;;  %600 = vmatprep.subr.bf16.mxu1 %v2671_v22  ;;  %v2698_v47 = vld [vmem:[#allocation7 + $0x8c] ss:$16 sps:$4 sm:$0xff]   ;;  %v2696_v48 = vld [vmem:[#allocation7 + $0x88] ss:$16 sps:$4 sm:$0xff]   ;;  %v2705_v53 = vld [vmem:[#allocation7 + $0xc0] ss:$16 sps:$4 sm:$0xff]  }
  0x6c   :  { %v2704_v49 = vld [vmem:[#allocation7 + $0xac] ss:$16 sps:$4 sm:$0xff]   ;;  %v2702_v50 = vld [vmem:[#allocation7 + $0xa8] ss:$16 sps:$4 sm:$0xff]   ;;  %v2713_v55 = vld [vmem:[#allocation7 + $0xe4] ss:$16 sps:$4 sm:$0xff]  }
  0x6d   :  { %2336 = vmatmul.mubr.msk.bf16.vlgmr.msra.gmra.mrb[0].mxu0 %vm243_vm0, %v98_v19  ;;  %2337 = vmatmul.mubr.msk.bf16.vlgmr.msra.gmra.mrb[0].mxu1 %vm243_vm0, %v98_v19  ;;  %v2710_v52 = vld [vmem:[#allocation7 + $0xcc] ss:$16 sps:$4 sm:$0xff]   ;;  %v2708_v54 = vld [vmem:[#allocation7 + $0xc8] ss:$16 sps:$4 sm:$0xff]   ;;  %v2711_v57 = vld [vmem:[#allocation7 + $0xe0] ss:$16 sps:$4 sm:$0xff]  }
  0x6e   :  { %330 = vmatpush1.bf16.msra.mxu0 %v2657_v20  ;;  %361 = vmatprep.mubr.bf16.mxu0 %v2996_v0  ;;  %v2716_v56 = vld [vmem:[#allocation7 + $0xec] ss:$16 sps:$4 sm:$0xff]   ;;  %v2714_v58 = vld [vmem:[#allocation7 + $0xe8] ss:$16 sps:$4 sm:$0xff]   ;;  %v2719_v59 = vld [vmem:[#allocation7 + $0x104] ss:$16 sps:$4 sm:$0xff]  }
  0x6f   :  { %331 = vmatprep.subr.bf16.mxu0 %v2662_v21  ;;  %601 = vmatpush1.bf16.msra.mxu1 %v2669_v23  ;;  %v2722_v60 = vld [vmem:[#allocation7 + $0x10c] ss:$16 sps:$4 sm:$0xff]   ;;  %v373_v63 = vsub.s32 0, %v372_v62  ;;  %v370_v1 = vld [vmem:[%s3340_s2] sm:$0xf]  ;;  %v379_v2 = vsub.s32 1, %v372_v62 }
  0x70   :  { %632 = vmatprep.mubr.bf16.mxu1 %v2996_v0  ;;  %602 = vmatprep.subr.bf16.mxu1 %v2677_v25  ;;  %v2717_v21 = vld [vmem:[#allocation7 + $0x100] ss:$16 sps:$4 sm:$0xff]   ;;  %v2720_v22 = vld [vmem:[#allocation7 + $0x108] ss:$16 sps:$4 sm:$0xff]   ;;  %v390_v23 = vsub.s32 3, %v372_v62 }
  0x71   :  { %v374_v3 = vrot.slane %v370_v1, %v373_v63  ;;  %v380_v6 = vrot.slane %v370_v1, %v379_v2  ;;  %v2728_v25 = vld [vmem:[#allocation7 + $0x12c] ss:$16 sps:$4 sm:$0xff]   ;;  %v2753_v61 = vld [vmem:[#allocation7 + $0x1c0] ss:$16 sps:$4 sm:$0xff]   ;;  %v2761_v63 = vld [vmem:[#allocation7 + $0x1e4] ss:$16 sps:$4 sm:$0xff]  }
  0x72   :  { %332 = vmatpush1.bf16.msra.mxu0 %v2660_v24  ;;  %v2725_v24 = vld [vmem:[#allocation7 + $0x124] ss:$16 sps:$4 sm:$0xff]   ;;  %v2759_v2 = vld [vmem:[#allocation7 + $0x1e0] ss:$16 sps:$4 sm:$0xff]  }
  0x73   :  { %333 = vmatprep.subr.bf16.mxu0 %v2665_v26  ;;  %603 = vmatpush1.bf16.msra.mxu1 %v2675_v27  ;;  %v385_v26 = vsub.s32 2, %v372_v62  ;;  %v2723_v27 = vld [vmem:[#allocation7 + $0x120] ss:$16 sps:$4 sm:$0xff]   ;;  %v2756_v62 = vld [vmem:[#allocation7 + $0x1c8] ss:$16 sps:$4 sm:$0xff]  }
  0x74   :  { %604 = vmatprep.subr.bf16.mxu1 %v2683_v28  ;;  %v2726_v28 = vld [vmem:[#allocation7 + $0x128] ss:$16 sps:$4 sm:$0xff]  }
  0x76   :  { %334 = vmatpush1.bf16.msra.mxu0 %v2663_v29  ;;  %v391_v29 = vrot.slane %v370_v1, %v390_v23 }
  0x77   :  { %335 = vmatprep.subr.bf16.mxu0 %v2668_v30  ;;  %605 = vmatpush1.bf16.msra.mxu1 %v2681_v31  ;;  %v2731_v30 = vld [vmem:[#allocation7 + $0x144] ss:$16 sps:$4 sm:$0xff]   ;;  %v2734_v31 = vld [vmem:[#allocation7 + $0x14c] ss:$16 sps:$4 sm:$0xff]  }
  0x78   :  { %606 = vmatprep.subr.bf16.mxu1 %v2689_v32  ;;  %v386_v32 = vrot.slane %v370_v1, %v385_v26  ;;  %v2764_v1 = vld [vmem:[#allocation7 + $0x1ec] ss:$16 sps:$4 sm:$0xff]   ;;  %v2768_v26 = vld [vmem:[#allocation7 + $0x208] ss:$16 sps:$4 sm:$0xff]  }
  0x7a   :  { %336 = vmatpush1.bf16.msra.mxu0 %v2666_v33 }
  0x7b   :  { %652 = vmatprep.subr.bf16.mxu0 %v2674_v34  ;;  %607 = vmatpush1.bf16.msra.mxu1 %v2687_v36  ;;  %v2729_v36 = vld [vmem:[#allocation7 + $0x140] ss:$16 sps:$4 sm:$0xff]  }
  0x7c   :  { %608 = vmatprep.subr.bf16.mxu1 %v2695_v38 }
  0x7d   :  { %2338 = vmatmul.mubr.msk.bf16.vlgmr.msra.gmra.mrb[4].mxu0 %vm243_vm0, %v98_v19 }
  0x7e   :  { %653 = vmatpush1.bf16.msra.mxu0 %v2672_v35  ;;  %684 = vmatprep.mubr.bf16.mxu0 %v2996_v0 }
  0x7f   :  { %654 = vmatprep.subr.bf16.mxu0 %v2680_v37  ;;  %609 = vmatpush1.bf16.msra.mxu1 %v2693_v39  ;;  %v2732_v37 = vld [vmem:[#allocation7 + $0x148] ss:$16 sps:$4 sm:$0xff]  }
  0x80   :  { %610 = vmatprep.subr.bf16.mxu1 %v2701_v40  ;;  %v2737_v40 = vld [vmem:[#allocation7 + $0x164] ss:$16 sps:$4 sm:$0xff]  }
  0x82   :  { %655 = vmatpush1.bf16.msra.mxu0 %v2678_v41  ;;  %v2740_v41 = vld [vmem:[#allocation7 + $0x16c] ss:$16 sps:$4 sm:$0xff]  }
  0x83   :  { %656 = vmatprep.subr.bf16.mxu0 %v2686_v42  ;;  %611 = vmatpush1.bf16.msra.mxu1 %v2699_v43 }
  0x84   :  { %612 = vmatprep.subr.bf16.mxu1 %v2707_v51  ;;  %v2746_v51 = vld [vmem:[#allocation7 + $0x18c] ss:$16 sps:$4 sm:$0xff]  }
  0x86   :  { %657 = vmatpush1.bf16.msra.mxu0 %v2684_v44 }
  0x87   :  { %658 = vmatprep.subr.bf16.mxu0 %v2692_v45  ;;  %613 = vmatpush1.bf16.msra.mxu1 %v2705_v53  ;;  %v2735_v45 = vld [vmem:[#allocation7 + $0x160] ss:$16 sps:$4 sm:$0xff]  }
  0x88   :  { %614 = vmatprep.subr.bf16.mxu1 %v2713_v55  ;;  %v2741_v53 = vld [vmem:[#allocation7 + $0x180] ss:$16 sps:$4 sm:$0xff]   ;;  %v2749_v55 = vld [vmem:[#allocation7 + $0x1a4] ss:$16 sps:$4 sm:$0xff]  }
  0x8a   :  { %659 = vmatpush1.bf16.msra.mxu0 %v2690_v46 }
  0x8b   :  { %660 = vmatprep.subr.bf16.mxu0 %v2698_v47  ;;  %615 = vmatpush1.bf16.msra.mxu1 %v2711_v57  ;;  %v2738_v47 = vld [vmem:[#allocation7 + $0x168] ss:$16 sps:$4 sm:$0xff]   ;;  %v2747_v57 = vld [vmem:[#allocation7 + $0x1a0] ss:$16 sps:$4 sm:$0xff]  }
  0x8c   :  { %949 = vmatprep.subr.bf16.mxu1 %v2719_v59  ;;  %v2755_v59 = vld [vmem:[#allocation7 + $0x1c4] ss:$16 sps:$4 sm:$0xff]  }
  0x8e   :  { %661 = vmatpush1.bf16.msra.mxu0 %v2696_v48 }
  0x8f   :  { %662 = vmatprep.subr.bf16.mxu0 %v2704_v49 }
  0x92   :  { %663 = vmatpush1.bf16.msra.mxu0 %v2702_v50  ;;  %v2743_v50 = vld [vmem:[#allocation7 + $0x184] ss:$16 sps:$4 sm:$0xff]  }
  0x93   :  { %664 = vmatprep.subr.bf16.mxu0 %v2710_v52 }
  0x96   :  { %665 = vmatpush1.bf16.msra.mxu0 %v2708_v54  ;;  %v2744_v54 = vld [vmem:[#allocation7 + $0x188] ss:$16 sps:$4 sm:$0xff]  }
  0x97   :  { %666 = vmatprep.subr.bf16.mxu0 %v2716_v56  ;;  %v2752_v56 = vld [vmem:[#allocation7 + $0x1ac] ss:$16 sps:$4 sm:$0xff]  }
  0x9a   :  { %667 = vmatpush1.bf16.msra.mxu0 %v2714_v58  ;;  %v2750_v58 = vld [vmem:[#allocation7 + $0x1a8] ss:$16 sps:$4 sm:$0xff]  }
  0x9b   :  { %1021 = vmatprep.subr.bf16.mxu0 %v2722_v60  ;;  %v2758_v60 = vld [vmem:[#allocation7 + $0x1cc] ss:$16 sps:$4 sm:$0xff]  }
 0x140   :  { %v281_v4 = vpop.f32.mrb[0].mxu0  ;;  %v322_v5 = vpop.f32.mrb[0].mxu1 }
 0x141   :  { %v375_v7 = vadd.f32 %v374_v3, %v281_v4  ;;  %v283_v8 = vpop.f32.mrb[1].mxu0  ;;  %v324_v9 = vpop.f32.mrb[1].mxu1  ;;  %v2762_v3 = vld [vmem:[#allocation7 + $0x1e8] ss:$16 sps:$4 sm:$0xff]   ;;  %v2767_v4 = vld [vmem:[#allocation7 + $0x204] ss:$16 sps:$4 sm:$0xff]  }
 0x142   :  { %v376_v10 = vadd.f32 %v324_v9, %v283_v8  ;;  %v285_v11 = vpop.f32.mrb[2].mxu0  ;;  %v326_v12 = vpop.f32.mrb[2].mxu1 }
 0x143   :  { %v286_v13 = vpop.f32.mrb[3].mxu0  ;;  %v327_v14 = vpop.f32.mrb[3].mxu1  ;;  %v397_v15 = vmul.f32 0.2, %v375_v7  ;;  %vm393_vm1 = vcmp.gt.f32.partialorder %v375_v7, 0.0 }
 0x144   :  { %v381_v16 = vadd.f32 %v380_v6, %v376_v10  ;;  %v3137_v6 = vld [vmem:[%s3342_s4] ss:$0 sm:$0xff] }
 0x145   :  { %v401_v18 = vsel %vm393_vm1, %v375_v7, %v397_v15 }
 0x146   :  { %vm394_vm2 = vcmp.gt.f32.partialorder %v381_v16, 0.0  ;;  %v398_v17 = vmul.f32 0.2, %v381_v16 }
 0x148   :  { %v402_v19 = vsel %vm394_vm2, %v381_v16, %v398_v17 }
 0x149   :  { %v406_v20 = vpack.c.bf16 %v402_v19, %v401_v18 }
 0x14b   :  { %633 = vmatmul.mubr.bf16.vlgmr.msra.gmra.mrb[4].mxu1 %v406_v20  ;;  %685 = vmatmul.mubr.bf16.vlgmr.msra.gmra.mrb[8].mxu0 %v406_v20 }
 0x14c   :  { %641 = vmatprep.mubr.bf16.mxu1 %v2996_v0  ;;  %694 = vmatprep.mubr.bf16.mxu0 %v2996_v0 }
 0x14d   :  { %950 = vmatpush1.bf16.msra.mxu1 %v2717_v21  ;;  %1022 = vmatpush1.bf16.msra.mxu0 %v2720_v22 }
 0x14e   :  { %951 = vmatprep.subr.bf16.mxu1 %v2725_v24  ;;  %1023 = vmatprep.subr.bf16.mxu0 %v2728_v25  ;;  %v2765_v25 = vld [vmem:[#allocation7 + $0x200] ss:$16 sps:$4 sm:$0xff]  }
 0x150   :  { %v363_v33 = vpop.f32.mrb[4].mxu0 }
 0x151   :  { %v382_v34 = vadd.f32 %v363_v33, %v322_v5  ;;  %v365_v35 = vpop.f32.mrb[5].mxu0  ;;  %952 = vmatpush1.bf16.msra.mxu1 %v2723_v27  ;;  %1024 = vmatpush1.bf16.msra.mxu0 %v2726_v28  ;;  %v2770_v5 = vld [vmem:[#allocation7 + $0x20c] ss:$16 sps:$4 sm:$0xff]   ;;  %v2773_v27 = vld [vmem:[#allocation7 + $0x224] ss:$16 sps:$4 sm:$0xff]  }
 0x152   :  { %v392_v38 = vadd.f32 %v391_v29, %v365_v35  ;;  %v367_v39 = vpop.f32.mrb[6].mxu0  ;;  %953 = vmatprep.subr.bf16.mxu1 %v2731_v30  ;;  %1025 = vmatprep.subr.bf16.mxu0 %v2734_v31  ;;  %v2776_v28 = vld [vmem:[#allocation7 + $0x22c] ss:$16 sps:$4 sm:$0xff]   ;;  %v2771_v29 = vld [vmem:[#allocation7 + $0x220] ss:$16 sps:$4 sm:$0xff]  }
 0x153   :  { %v387_v42 = vadd.f32 %v386_v32, %v382_v34  ;;  %v368_v43 = vpop.f32.mrb[7].mxu0  ;;  %v2774_v30 = vld [vmem:[#allocation7 + $0x228] ss:$16 sps:$4 sm:$0xff]   ;;  %v2779_v31 = vld [vmem:[#allocation7 + $0x244] ss:$16 sps:$4 sm:$0xff]  }
 0x154   :  { %vm396_vm3 = vcmp.gt.f32.partialorder %v392_v38, 0.0  ;;  %v400_v44 = vmul.f32 0.2, %v392_v38  ;;  %v2782_v32 = vld [vmem:[#allocation7 + $0x24c] ss:$16 sps:$4 sm:$0xff]  }
 0x155   :  { %vm395_vm4 = vcmp.gt.f32.partialorder %v387_v42, 0.0  ;;  %v399_v46 = vmul.f32 0.2, %v387_v42  ;;  %954 = vmatpush1.bf16.msra.mxu1 %v2729_v36  ;;  %1026 = vmatpush1.bf16.msra.mxu0 %v2732_v37  ;;  %v2777_v36 = vld [vmem:[#allocation7 + $0x240] ss:$16 sps:$4 sm:$0xff]  }
 0x156   :  { %v404_v48 = vsel %vm396_vm3, %v392_v38, %v400_v44  ;;  %955 = vmatprep.subr.bf16.mxu1 %v2737_v40  ;;  %1027 = vmatprep.subr.bf16.mxu0 %v2740_v41  ;;  %v2780_v37 = vld [vmem:[#allocation7 + $0x248] ss:$16 sps:$4 sm:$0xff]   ;;  %v2785_v43 = vld [vmem:[#allocation7 + $0x264] ss:$16 sps:$4 sm:$0xff]  }
 0x157   :  { %v403_v49 = vsel %vm395_vm4, %v387_v42, %v399_v46 }
 0x158   :  { %v407_v52 = vpack.c.bf16 %v404_v48, %v403_v49 }
 0x159   :  { %956 = vmatpush1.bf16.msra.mxu1 %v2735_v45  ;;  %1028 = vmatpush1.bf16.msra.mxu0 %v2738_v47  ;;  %v2788_v47 = vld [vmem:[#allocation7 + $0x26c] ss:$16 sps:$4 sm:$0xff]  }
 0x15a   :  { %642 = vmatmul.mubr.bf16.gmra.mrb[8].mxu1 %v407_v52  ;;  %695 = vmatmul.mubr.bf16.gmra.mrb[12].mxu0 %v407_v52 }
 0x15b   :  { %957 = vmatprep.subr.bf16.mxu1 %v2743_v50  ;;  %1029 = vmatprep.subr.bf16.mxu0 %v2746_v51 }
 0x15c   :  { %981 = vmatprep.mubr.bf16.mxu1 %v2996_v0  ;;  %1053 = vmatprep.mubr.bf16.mxu0 %v2996_v0 }
 0x15d   :  { %958 = vmatpush1.bf16.msra.mxu1 %v2741_v53  ;;  %1030 = vmatpush1.bf16.msra.mxu0 %v2744_v54 }
 0x15e   :  { %959 = vmatprep.subr.bf16.mxu1 %v2749_v55  ;;  %1031 = vmatprep.subr.bf16.mxu0 %v2752_v56 }
 0x161   :  { %960 = vmatpush1.bf16.msra.mxu1 %v2747_v57  ;;  %1032 = vmatpush1.bf16.msra.mxu0 %v2750_v58 }
 0x162   :  { %961 = vmatprep.subr.bf16.mxu1 %v2755_v59  ;;  %1033 = vmatprep.subr.bf16.mxu0 %v2758_v60 }
 0x165   :  { %962 = vmatpush1.bf16.msra.mxu1 %v2753_v61  ;;  %1034 = vmatpush1.bf16.msra.mxu0 %v2756_v62  ;;  %v2783_v61 = vld [vmem:[#allocation7 + $0x260] ss:$16 sps:$4 sm:$0xff]  }
 0x166   :  { %963 = vmatprep.subr.bf16.mxu1 %v2761_v63  ;;  %1035 = vmatprep.subr.bf16.mxu0 %v2764_v1  ;;  %v2786_v1 = vld [vmem:[#allocation7 + $0x268] ss:$16 sps:$4 sm:$0xff]  }
 0x169   :  { %964 = vmatpush1.bf16.msra.mxu1 %v2759_v2  ;;  %1036 = vmatpush1.bf16.msra.mxu0 %v2762_v3  ;;  %v2791_v2 = vld [vmem:[#allocation7 + $0x284] ss:$16 sps:$4 sm:$0xff]  }
 0x16a   :  { %1382 = vmatprep.subr.bf16.mxu1 %v2767_v4  ;;  %1494 = vmatprep.subr.bf16.mxu0 %v2770_v5  ;;  %v2794_v5 = vld [vmem:[#allocation7 + $0x28c] ss:$16 sps:$4 sm:$0xff]  }
 0x21e   :  { %v634_v7 = vpop.f32.mrb[4].mxu1  ;;  %v686_v8 = vpop.f32.mrb[8].mxu0 }
 0x21f   :  { %v730_v9 = vadd.f32 %v3137_v6, %v686_v8  ;;  %v635_v10 = vpop.f32.mrb[5].mxu1  ;;  %v688_v11 = vpop.f32.mrb[9].mxu0 }
 0x220   :  { %v710_v12 = vadd.f32 %v3137_v6, %v635_v10  ;;  %v637_v13 = vpop.f32.mrb[6].mxu1  ;;  %v690_v14 = vpop.f32.mrb[10].mxu0  ;;  %v2789_v10 = vld [vmem:[#allocation7 + $0x280] ss:$16 sps:$4 sm:$0xff]  }
 0x221   :  { %v734_v15 = vadd.f32 %v730_v9, %v637_v13  ;;  %v639_v16 = vpop.f32.mrb[7].mxu1  ;;  %v692_v17 = vpop.f32.mrb[11].mxu0  ;;  %v731_v33 = vadd.f32 %v3137_v6, %v690_v14  ;;  %v2800_v13 = vld [vmem:[#allocation7 + $0x2ac] ss:$16 sps:$4 sm:$0xff]   ;;  %v2795_v14 = vld [vmem:[#allocation7 + $0x2a0] ss:$16 sps:$4 sm:$0xff]  }
 0x222   :  { %vm718_vm5 = vcmp.gt.f32.partialorder %v710_v12, 0.0  ;;  %v722_v18 = vmul.f32 0.2, %v710_v12  ;;  %v711_v19 = vadd.f32 %v3137_v6, %v639_v16  ;;  %v2803_v16 = vld [vmem:[#allocation7 + $0x2c4] ss:$16 sps:$4 sm:$0xff]  }
 0x223   :  { %vm738_vm6 = vcmp.gt.f32.partialorder %v734_v15, 0.0  ;;  %v742_v20 = vmul.f32 0.2, %v734_v15 }
 0x224   :  { %v726_v21 = vsel %vm718_vm5, %v710_v12, %v722_v18  ;;  %v715_v22 = vadd.f32 %v711_v19, %v688_v11  ;;  %v2792_v11 = vld [vmem:[#allocation7 + $0x288] ss:$16 sps:$4 sm:$0xff]   ;;  %v2797_v12 = vld [vmem:[#allocation7 + $0x2a4] ss:$16 sps:$4 sm:$0xff]   ;;  %v2801_v18 = vld [vmem:[#allocation7 + $0x2c0] ss:$16 sps:$4 sm:$0xff]  }
 0x225   :  { %v746_v23 = vsel %vm738_vm6, %v734_v15, %v742_v20  ;;  %v2798_v15 = vld [vmem:[#allocation7 + $0x2a8] ss:$16 sps:$4 sm:$0xff]   ;;  %v2809_v20 = vld [vmem:[#allocation7 + $0x2e4] ss:$16 sps:$4 sm:$0xff]  }
 0x226   :  { %v752_v24 = vpack.c.bf16 %v746_v23, %v726_v21  ;;  %v723_v38 = vmul.f32 0.2, %v715_v22  ;;  %vm719_vm7 = vcmp.gt.f32.partialorder %v715_v22, 0.0  ;;  %v2804_v19 = vld [vmem:[#allocation7 + $0x2c8] ss:$16 sps:$4 sm:$0xff]  }
 0x227   :  { %v2812_v21 = vld [vmem:[#allocation7 + $0x2ec] ss:$16 sps:$4 sm:$0xff]   ;;  %v2810_v23 = vld [vmem:[#allocation7 + $0x2e8] ss:$16 sps:$4 sm:$0xff]  }
 0x228   :  { %982 = vmatmul.mubr.bf16.vlgmr.msra.gmra.mrb[12].mxu1 %v752_v24  ;;  %1054 = vmatmul.mubr.bf16.vlgmr.msra.gmra.mrb[16].mxu0 %v752_v24  ;;  %v727_v57 = vsel %vm719_vm7, %v715_v22, %v723_v38  ;;  %v2807_v22 = vld [vmem:[#allocation7 + $0x2e0] ss:$16 sps:$4 sm:$0xff]  }
 0x229   :  { %990 = vmatprep.mubr.bf16.mxu1 %v2996_v0  ;;  %1063 = vmatprep.mubr.bf16.mxu0 %v2996_v0  ;;  %v2813_v24 = vld [vmem:[#allocation10 + $0x40] sm:$0xff]  }
 0x22a   :  { %1383 = vmatpush1.bf16.msra.mxu1 %v2765_v25  ;;  %1495 = vmatpush1.bf16.msra.mxu0 %v2768_v26  ;;  %v3157_v25 = vld [vmem:[#allocation8 + $0x40] sm:$0xff]   ;;  %v3163_v26 = vld [vmem:[%s3342_s4 + $0x1] ss:$0 sm:$0xff] }
 0x22b   :  { %1384 = vmatprep.subr.bf16.mxu1 %v2773_v27  ;;  %1496 = vmatprep.subr.bf16.mxu0 %v2776_v28 }
 0x22d   :  { %v643_v34 = vpop.f32.mrb[8].mxu1  ;;  %v696_v35 = vpop.f32.mrb[12].mxu0 }
 0x22e   :  { %v735_v39 = vadd.f32 %v731_v33, %v643_v34  ;;  %v732_v40 = vadd.f32 %v3137_v6, %v696_v35  ;;  %v645_v41 = vpop.f32.mrb[9].mxu1  ;;  %v698_v42 = vpop.f32.mrb[13].mxu0  ;;  %1385 = vmatpush1.bf16.msra.mxu1 %v2771_v29  ;;  %1497 = vmatpush1.bf16.msra.mxu0 %v2774_v30 }
 0x22f   :  { %v712_v44 = vadd.f32 %v3137_v6, %v645_v41  ;;  %v647_v45 = vpop.f32.mrb[10].mxu1  ;;  %v700_v46 = vpop.f32.mrb[14].mxu0  ;;  %1386 = vmatprep.subr.bf16.mxu1 %v2779_v31  ;;  %1498 = vmatprep.subr.bf16.mxu0 %v2782_v32 }
 0x230   :  { %vm739_vm8 = vcmp.gt.f32.partialorder %v735_v39, 0.0  ;;  %v743_v48 = vmul.f32 0.2, %v735_v39  ;;  %v736_v49 = vadd.f32 %v732_v40, %v647_v45  ;;  %v733_v50 = vadd.f32 %v3137_v6, %v700_v46  ;;  %v649_v51 = vpop.f32.mrb[11].mxu1  ;;  %v702_v52 = vpop.f32.mrb[15].mxu0  ;;  %v2814_v45 = vld [vmem:[#allocation10] sm:$0xff]  }
 0x231   :  { %v716_v53 = vadd.f32 %v712_v44, %v692_v17  ;;  %v713_v54 = vadd.f32 %v3137_v6, %v649_v51  ;;  %v2806_v17 = vld [vmem:[#allocation7 + $0x2cc] ss:$16 sps:$4 sm:$0xff]   ;;  %v3168_v46 = vld [vmem:[#allocation8] sm:$0xff]   ;;  %v2817_v52 = vld [vmem:[#allocation10 + $0x50] sm:$0xff]  }
 0x232   :  { %vm740_vm9 = vcmp.gt.f32.partialorder %v736_v49, 0.0  ;;  %v744_v55 = vmul.f32 0.2, %v736_v49  ;;  %v745_v56 = vmul.f32 0.2, %v733_v50  ;;  %1387 = vmatpush1.bf16.msra.mxu1 %v2777_v36  ;;  %1499 = vmatpush1.bf16.msra.mxu0 %v2780_v37  ;;  %v747_v60 = vsel %vm739_vm8, %v735_v39, %v743_v48  ;;  %v3170_v48 = vld [vmem:[#allocation8 + $0x48] sm:$0xff]  }
 0x233   :  { %vm720_vm10 = vcmp.gt.f32.partialorder %v716_v53, 0.0  ;;  %v724_v58 = vmul.f32 0.2, %v716_v53  ;;  %v717_v59 = vadd.f32 %v713_v54, %v698_v42  ;;  %1388 = vmatprep.subr.bf16.mxu1 %v2785_v43  ;;  %1500 = vmatprep.subr.bf16.mxu0 %v2788_v47  ;;  %vm741_vm11 = vcmp.gt.f32.partialorder %v733_v50, 0.0  ;;  %v2815_v47 = vld [vmem:[#allocation10 + $0x48] sm:$0xff]  }
 0x234   :  { %v753_v62 = vpack.c.bf16 %v747_v60, %v727_v57  ;;  %v748_v63 = vsel %vm740_vm9, %v736_v49, %v744_v55  ;;  %v749_v8 = vsel %vm741_vm11, %v733_v50, %v745_v56  ;;  %v2816_v49 = vld [vmem:[#allocation10 + $0x8] sm:$0xff]  }
 0x235   :  { %vm721_vm12 = vcmp.gt.f32.partialorder %v717_v59, 0.0  ;;  %v725_v3 = vmul.f32 0.2, %v717_v59  ;;  %v728_v4 = vsel %vm720_vm10, %v716_v53, %v724_v58  ;;  %v3175_v50 = vld [vmem:[#allocation8 + $0x8] sm:$0xff]   ;;  %v3179_v53 = vld [vmem:[#allocation8 + $0x50] sm:$0xff]  }
 0x236   :  { %991 = vmatmul.mubr.bf16.gmra.mrb[16].mxu1 %v753_v62  ;;  %1064 = vmatmul.mubr.bf16.gmra.mrb[20].mxu0 %v753_v62  ;;  %v754_v6 = vpack.c.bf16 %v748_v63, %v728_v4 }
 0x237   :  { %1000 = vmatprep.mubr.bf16.mxu1 %v2996_v0  ;;  %1073 = vmatprep.mubr.bf16.mxu0 %v2996_v0  ;;  %v729_v7 = vsel %vm721_vm12, %v717_v59, %v725_v3  ;;  %v3184_v3 = vld [vmem:[#allocation8 + $0x10] sm:$0xff]  }
 0x238   :  { %v755_v9 = vpack.c.bf16 %v749_v8, %v729_v7  ;;  %1389 = vmatpush1.bf16.msra.mxu1 %v2783_v61  ;;  %1501 = vmatpush1.bf16.msra.mxu0 %v2786_v1  ;;  %v2819_v1 = vld [vmem:[#allocation10 + $0x10] sm:$0xff]   ;;  %v3187_v8 = vld [vmem:[#allocation8 + $0x58] sm:$0xff]  }
 0x239   :  { %1390 = vmatprep.subr.bf16.mxu1 %v2791_v2  ;;  %1502 = vmatprep.subr.bf16.mxu0 %v2794_v5  ;;  %v2821_v2 = vld [vmem:[#allocation10 + $0x58] sm:$0xff]  }
 0x23c   :  { %1391 = vmatpush1.bf16.msra.mxu1 %v2789_v10  ;;  %1503 = vmatpush1.bf16.msra.mxu0 %v2792_v11 }
 0x23d   :  { %1392 = vmatprep.subr.bf16.mxu1 %v2797_v12  ;;  %1504 = vmatprep.subr.bf16.mxu0 %v2800_v13 }
 0x23e   :  { %1001 = vmatmul.mubr.bf16.gmra.mrb[20].mxu1 %v754_v6  ;;  %1074 = vmatmul.mubr.bf16.gmra.mrb[24].mxu0 %v754_v6 }
 0x23f   :  { %1010 = vmatprep.mubr.bf16.mxu1 %v2996_v0  ;;  %1083 = vmatprep.mubr.bf16.mxu0 %v2996_v0 }
 0x240   :  { %1393 = vmatpush1.bf16.msra.mxu1 %v2795_v14  ;;  %1505 = vmatpush1.bf16.msra.mxu0 %v2798_v15 }
 0x241   :  { %1394 = vmatprep.subr.bf16.mxu1 %v2803_v16  ;;  %1506 = vmatprep.subr.bf16.mxu0 %v2806_v17  ;;  %v2823_v17 = vld [vmem:[#allocation10 + $0x18] sm:$0xff]  }
 0x244   :  { %1395 = vmatpush1.bf16.msra.mxu1 %v2801_v18  ;;  %1507 = vmatpush1.bf16.msra.mxu0 %v2804_v19  ;;  %v3192_v18 = vld [vmem:[#allocation8 + $0x18] sm:$0xff]  }
 0x245   :  { %1396 = vmatprep.subr.bf16.mxu1 %v2809_v20  ;;  %1508 = vmatprep.subr.bf16.mxu0 %v2812_v21  ;;  %v2825_v21 = vld [vmem:[#allocation10 + $0x60] sm:$0xff]  }
 0x246   :  { %1011 = vmatmul.mubr.bf16.gmra.mrb[24].mxu1 %v755_v9  ;;  %1084 = vmatmul.mubr.bf16.gmra.mrb[28].mxu0 %v755_v9 }
 0x247   :  { %1414 = vmatprep.mubr.bf16.mxu1 %v2996_v0  ;;  %1526 = vmatprep.mubr.bf16.mxu0 %v2996_v0 }
 0x248   :  { %1397 = vmatpush1.bf16.msra.mxu1 %v2807_v22  ;;  %1509 = vmatpush1.bf16.msra.mxu0 %v2810_v23 }
 0x249   :  { %2473 = vmatprep.subr.bf16.mxu1 %v2813_v24  ;;  %2537 = vmatprep.subr.bf16.mxu0 %v3157_v25 }
 0x2fb   :  { %v983_v27 = vpop.f32.mrb[12].mxu1  ;;  %v1055_v28 = vpop.f32.mrb[16].mxu0 }
 0x2fc   :  { %v1139_v29 = vadd.f32 %v3163_v26, %v1055_v28  ;;  %v984_v30 = vpop.f32.mrb[13].mxu1  ;;  %v1057_v31 = vpop.f32.mrb[17].mxu0 }
 0x2fd   :  { %v1099_v32 = vadd.f32 %v3163_v26, %v984_v30  ;;  %v986_v33 = vpop.f32.mrb[14].mxu1  ;;  %v1059_v34 = vpop.f32.mrb[18].mxu0 }
 0x2fe   :  { %v1147_v35 = vadd.f32 %v1139_v29, %v986_v33  ;;  %v988_v36 = vpop.f32.mrb[15].mxu1  ;;  %v1061_v37 = vpop.f32.mrb[19].mxu0  ;;  %v1140_v51 = vadd.f32 %v3163_v26, %v1059_v34 }
 0x2ff   :  { %vm1115_vm13 = vcmp.gt.f32.partialorder %v1099_v32, 0.0  ;;  %v1123_v38 = vmul.f32 0.2, %v1099_v32  ;;  %v1100_v39 = vadd.f32 %v3163_v26, %v988_v36  ;;  %v2827_v36 = vld [vmem:[#allocation10 + $0x20] sm:$0xff]  }
 0x300   :  { %vm1155_vm14 = vcmp.gt.f32.partialorder %v1147_v35, 0.0  ;;  %v1163_v40 = vmul.f32 0.2, %v1147_v35 }
 0x301   :  { %v1131_v41 = vsel %vm1115_vm13, %v1099_v32, %v1123_v38  ;;  %v1108_v42 = vadd.f32 %v1100_v39, %v1057_v31 }
 0x302   :  { %v1171_v43 = vsel %vm1155_vm14, %v1147_v35, %v1163_v40 }
 0x303   :  { %v1181_v44 = vpack.c.bf16 %v1171_v43, %v1131_v41  ;;  %v1124_v56 = vmul.f32 0.2, %v1108_v42  ;;  %vm1116_vm15 = vcmp.gt.f32.partialorder %v1108_v42, 0.0  ;;  %v2829_v41 = vld [vmem:[#allocation10 + $0x68] sm:$0xff]  }
 0x305   :  { %1415 = vmatmul.mubr.bf16.vlgmr.msra.gmra.mrb[28].mxu1 %v1181_v44  ;;  %1527 = vmatmul.mubr.bf16.vlgmr.msra.gmra.mrb[32].mxu0 %v1181_v44  ;;  %v1132_v12 = vsel %vm1116_vm15, %v1108_v42, %v1124_v56 }
 0x306   :  { %1423 = vmatprep.mubr.bf16.mxu1 %v2996_v0  ;;  %1536 = vmatprep.mubr.bf16.mxu0 %v2996_v0 }
 0x307   :  { %2474 = vmatpush3.bf16.msra.mxu1 %v2814_v45  ;;  %2538 = vmatpush3.bf16.msra.mxu0 %v3168_v46 }
 0x308   :  { %2475 = vmatprep.subr.bf16.mxu1 %v2815_v47  ;;  %2539 = vmatprep.subr.bf16.mxu0 %v3170_v48 }
 0x309   :  { %v992_v54 = vpop.f32.mrb[16].mxu1  ;;  %v1065_v55 = vpop.f32.mrb[20].mxu0 }
 0x30a   :  { %v1148_v57 = vadd.f32 %v1140_v51, %v992_v54  ;;  %v1141_v58 = vadd.f32 %v3163_v26, %v1065_v55  ;;  %v994_v59 = vpop.f32.mrb[17].mxu1  ;;  %v1067_v60 = vpop.f32.mrb[21].mxu0  ;;  %v2831_v54 = vld [vmem:[#allocation10 + $0x28] sm:$0xff]  }
 0x30b   :  { %v1101_v61 = vadd.f32 %v3163_v26, %v994_v59  ;;  %v996_v62 = vpop.f32.mrb[18].mxu1  ;;  %v1069_v63 = vpop.f32.mrb[22].mxu0  ;;  %2476 = vmatpush3.bf16.msra.mxu1 %v2816_v49  ;;  %2540 = vmatpush3.bf16.msra.mxu0 %v3175_v50 }
 0x30c   :  { %vm1156_vm0 = vcmp.gt.f32.partialorder %v1148_v57, 0.0  ;;  %v1164_v4 = vmul.f32 0.2, %v1148_v57  ;;  %v1149_v5 = vadd.f32 %v1141_v58, %v996_v62  ;;  %v998_v6 = vpop.f32.mrb[19].mxu1  ;;  %v1071_v7 = vpop.f32.mrb[23].mxu0  ;;  %2477 = vmatprep.subr.bf16.mxu1 %v2817_v52  ;;  %2541 = vmatprep.subr.bf16.mxu0 %v3179_v53  ;;  %v1142_v19 = vadd.f32 %v3163_v26, %v1069_v63 }
 0x30d   :  { %v1109_v9 = vadd.f32 %v1101_v61, %v1061_v37  ;;  %v1102_v10 = vadd.f32 %v3163_v26, %v998_v6 }
 0x30e   :  { %vm1157_vm1 = vcmp.gt.f32.partialorder %v1149_v5, 0.0  ;;  %v1165_v11 = vmul.f32 0.2, %v1149_v5  ;;  %v1172_v13 = vsel %vm1156_vm0, %v1148_v57, %v1164_v4 }
 0x30f   :  { %vm1117_vm2 = vcmp.gt.f32.partialorder %v1109_v9, 0.0  ;;  %v1125_v14 = vmul.f32 0.2, %v1109_v9  ;;  %v1110_v15 = vadd.f32 %v1102_v10, %v1067_v60  ;;  %v1182_v16 = vpack.c.bf16 %v1172_v13, %v1132_v12  ;;  %2478 = vmatpush3.bf16.msra.mxu1 %v2819_v1  ;;  %2542 = vmatpush3.bf16.msra.mxu0 %v3184_v3 }
 0x310   :  { %v1173_v20 = vsel %vm1157_vm1, %v1149_v5, %v1165_v11  ;;  %2479 = vmatprep.subr.bf16.mxu1 %v2821_v2  ;;  %2543 = vmatprep.subr.bf16.mxu0 %v3187_v8 }
 0x311   :  { %v1002_v22 = vpop.f32.mrb[20].mxu1  ;;  %v1075_v23 = vpop.f32.mrb[24].mxu0  ;;  %1424 = vmatmul.mubr.bf16.gmra.mrb[32].mxu1 %v1182_v16  ;;  %1537 = vmatmul.mubr.bf16.gmra.mrb[36].mxu0 %v1182_v16  ;;  %v1133_v24 = vsel %vm1117_vm2, %v1109_v9, %v1125_v14  ;;  %v1126_v27 = vmul.f32 0.2, %v1110_v15  ;;  %vm1118_vm3 = vcmp.gt.f32.partialorder %v1110_v15, 0.0 }
 0x312   :  { %v1150_v28 = vadd.f32 %v1142_v19, %v1002_v22  ;;  %v1143_v29 = vadd.f32 %v3163_v26, %v1075_v23  ;;  %v1004_v30 = vpop.f32.mrb[21].mxu1  ;;  %v1077_v31 = vpop.f32.mrb[25].mxu0  ;;  %1433 = vmatprep.mubr.bf16.mxu1 %v2996_v0  ;;  %1546 = vmatprep.mubr.bf16.mxu0 %v2996_v0  ;;  %v1183_v32 = vpack.c.bf16 %v1173_v20, %v1133_v24 }
 0x313   :  { %v1103_v33 = vadd.f32 %v3163_v26, %v1004_v30  ;;  %v1006_v34 = vpop.f32.mrb[22].mxu1  ;;  %v1079_v35 = vpop.f32.mrb[26].mxu0  ;;  %2480 = vmatpush3.bf16.msra.mxu1 %v2823_v17  ;;  %2544 = vmatpush3.bf16.msra.mxu0 %v3192_v18  ;;  %v1134_v45 = vsel %vm1118_vm3, %v1110_v15, %v1126_v27 }
 0x314   :  { %vm1158_vm4 = vcmp.gt.f32.partialorder %v1150_v28, 0.0  ;;  %v1166_v37 = vmul.f32 0.2, %v1150_v28  ;;  %v1151_v38 = vadd.f32 %v1143_v29, %v1006_v34  ;;  %v1008_v39 = vpop.f32.mrb[23].mxu1  ;;  %v1081_v40 = vpop.f32.mrb[27].mxu0  ;;  %2481 = vmatprep.subr.bf16.mxu1 %v2825_v21  ;;  %v1144_v55 = vadd.f32 %v3163_v26, %v1079_v35  ;;  %v3228_v34 = vld [vmem:[#allocation8 + $0x28] sm:$0xff]  }
 0x315   :  { %v1111_v42 = vadd.f32 %v1103_v33, %v1071_v7  ;;  %v1104_v43 = vadd.f32 %v3163_v26, %v1008_v39  ;;  %v3226_v33 = vld [vmem:[#allocation8 + $0x68] sm:$0xff]   ;;  %v2834_v35 = vld [vmem:[#allocation10 + $0x70] sm:$0xff]   ;;  %v3240_v39 = vld [vmem:[#allocation8 + $0x38] sm:$0xff]  }
 0x316   :  { %vm1159_vm5 = vcmp.gt.f32.partialorder %v1151_v38, 0.0  ;;  %v1167_v44 = vmul.f32 0.2, %v1151_v38  ;;  %v1174_v47 = vsel %vm1158_vm4, %v1150_v28, %v1166_v37  ;;  %v3234_v37 = vld [vmem:[#allocation8 + $0x30] sm:$0xff]  }
 0x317   :  { %vm1119_vm6 = vcmp.gt.f32.partialorder %v1111_v42, 0.0  ;;  %v1127_v49 = vmul.f32 0.2, %v1111_v42  ;;  %v1112_v51 = vadd.f32 %v1104_v43, %v1077_v31  ;;  %v1184_v52 = vpack.c.bf16 %v1174_v47, %v1134_v45  ;;  %2482 = vmatpush3.bf16.msra.mxu1 %v2827_v36  ;;  %v3220_v31 = vld [vmem:[#allocation8 + $0x60] sm:$0xff]   ;;  %v2836_v36 = vld [vmem:[#allocation10 + $0x30] sm:$0xff]  }
 0x318   :  { %v1175_v56 = vsel %vm1159_vm5, %v1151_v38, %v1167_v44  ;;  %2483 = vmatprep.subr.bf16.mxu1 %v2829_v41  ;;  %2545 = vmatprep.subr.bf16.mxu0 %v3220_v31  ;;  %v3238_v38 = vld [vmem:[#allocation8 + $0x78] sm:$0xff]  }
 0x319   :  { %v1012_v57 = vpop.f32.mrb[24].mxu1  ;;  %v1085_v58 = vpop.f32.mrb[28].mxu0  ;;  %1434 = vmatmul.mubr.bf16.gmra.mrb[36].mxu1 %v1183_v32  ;;  %1547 = vmatmul.mubr.bf16.gmra.mrb[40].mxu0 %v1183_v32  ;;  %v1135_v59 = vsel %vm1119_vm6, %v1111_v42, %v1127_v49  ;;  %v1128_v60 = vmul.f32 0.2, %v1112_v51  ;;  %vm1120_vm7 = vcmp.gt.f32.partialorder %v1112_v51, 0.0  ;;  %v3222_v32 = vld [vmem:[#allocation8 + $0x20] sm:$0xff]  }
 0x31a   :  { %v1152_v61 = vadd.f32 %v1144_v55, %v1012_v57  ;;  %v1145_v62 = vadd.f32 %v3163_v26, %v1085_v58  ;;  %v1014_v63 = vpop.f32.mrb[25].mxu1  ;;  %v1087_v1 = vpop.f32.mrb[29].mxu0  ;;  %1443 = vmatprep.mubr.bf16.mxu1 %v2996_v0  ;;  %1556 = vmatprep.mubr.bf16.mxu0 %v2996_v0  ;;  %v1185_v2 = vpack.c.bf16 %v1175_v56, %v1135_v59  ;;  %v2842_v41 = vld [vmem:[#allocation10 + $0x38] sm:$0xff]  }
 0x31b   :  { %v1105_v4 = vadd.f32 %v3163_v26, %v1014_v63  ;;  %v1016_v5 = vpop.f32.mrb[26].mxu1  ;;  %v1089_v6 = vpop.f32.mrb[30].mxu0  ;;  %2484 = vmatpush3.bf16.msra.mxu1 %v2831_v54  ;;  %v1136_v17 = vsel %vm1120_vm7, %v1112_v51, %v1128_v60  ;;  %2546 = vmatpush3.bf16.msra.mxu0 %v3222_v32  ;;  %v3248_v42 = vld [vmem:[%s3342_s4 + $0x2] ss:$0 sm:$0xff]  ;;  %v2997_v63 = vmov 0.0  }
 0x31c   :  { %vm1160_vm8 = vcmp.gt.f32.partialorder %v1152_v61, 0.0  ;;  %v1168_v7 = vmul.f32 0.2, %v1152_v61  ;;  %v1153_v9 = vadd.f32 %v1145_v62, %v1016_v5  ;;  %v1146_v10 = vadd.f32 %v3163_v26, %v1089_v6  ;;  %v1018_v11 = vpop.f32.mrb[27].mxu1  ;;  %v1091_v12 = vpop.f32.mrb[31].mxu0  ;;  %2547 = vmatprep.subr.bf16.mxu0 %v3226_v33  ;;  %2485 = vmatprep.subr.bf16.mxu1 %v2834_v35 }
 0x31d   :  { %v1113_v13 = vadd.f32 %v1105_v4, %v1081_v40  ;;  %v1106_v14 = vadd.f32 %v3163_v26, %v1018_v11  ;;  %v2840_v40 = vld [vmem:[#allocation10 + $0x78] sm:$0xff]  }
 0x31e   :  { %vm1161_vm9 = vcmp.gt.f32.partialorder %v1153_v9, 0.0  ;;  %v1169_v15 = vmul.f32 0.2, %v1153_v9  ;;  %v1170_v16 = vmul.f32 0.2, %v1146_v10  ;;  %v1176_v21 = vsel %vm1160_vm8, %v1152_v61, %v1168_v7 }
 0x31f   :  { %vm1121_vm10 = vcmp.gt.f32.partialorder %v1113_v13, 0.0  ;;  %v1129_v19 = vmul.f32 0.2, %v1113_v13  ;;  %v1114_v20 = vadd.f32 %v1106_v14, %v1087_v1  ;;  %vm1162_vm11 = vcmp.gt.f32.partialorder %v1146_v10, 0.0  ;;  %2548 = vmatpush3.bf16.msra.mxu0 %v3228_v34  ;;  %2486 = vmatpush3.bf16.msra.mxu1 %v2836_v36 }
 0x320   :  { %v1186_v22 = vpack.c.bf16 %v1176_v21, %v1136_v17  ;;  %v1177_v23 = vsel %vm1161_vm9, %v1153_v9, %v1169_v15  ;;  %v1178_v29 = vsel %vm1162_vm11, %v1146_v10, %v1170_v16  ;;  %2487 = vmatprep.subr.bf16.mxu1 %v2840_v40 }
 0x321   :  { %vm1122_vm12 = vcmp.gt.f32.partialorder %v1114_v20, 0.0  ;;  %v1130_v24 = vmul.f32 0.2, %v1114_v20  ;;  %1444 = vmatmul.mubr.bf16.gmra.mrb[40].mxu1 %v1184_v52  ;;  %1557 = vmatmul.mubr.bf16.gmra.mrb[44].mxu0 %v1184_v52  ;;  %v1137_v27 = vsel %vm1121_vm10, %v1113_v13, %v1129_v19 }
 0x322   :  { %1453 = vmatprep.mubr.bf16.mxu1 %v2996_v0  ;;  %1566 = vmatprep.mubr.bf16.mxu0 %v2996_v0  ;;  %v1187_v26 = vpack.c.bf16 %v1177_v23, %v1137_v27 }
 0x323   :  { %v1138_v28 = vsel %vm1122_vm12, %v1114_v20, %v1130_v24  ;;  %2488 = vmatpush3.bf16.msra.mxu1 %v2842_v41 }
 0x324   :  { %v1188_v30 = vpack.c.bf16 %v1178_v29, %v1138_v28  ;;  %2601 = vmatprep.subr.bf16.mxu1 %v3157_v25 }
 0x329   :  { %1454 = vmatmul.mubr.bf16.gmra.mrb[44].mxu1 %v1185_v2  ;;  %1567 = vmatmul.mubr.bf16.gmra.mrb[48].mxu0 %v1185_v2 }
 0x32a   :  { %1463 = vmatprep.mubr.bf16.mxu1 %v2996_v0  ;;  %1576 = vmatprep.mubr.bf16.mxu0 %v2996_v0 }
 0x331   :  { %1464 = vmatmul.mubr.bf16.gmra.mrb[48].mxu1 %v1186_v22  ;;  %1577 = vmatmul.mubr.bf16.gmra.mrb[52].mxu0 %v1186_v22 }
 0x332   :  { %1473 = vmatprep.mubr.bf16.mxu1 %v2996_v0  ;;  %1586 = vmatprep.mubr.bf16.mxu0 %v2996_v0 }
 0x339   :  { %1474 = vmatmul.mubr.bf16.gmra.mrb[52].mxu1 %v1187_v26  ;;  %1587 = vmatmul.mubr.bf16.gmra.mrb[56].mxu0 %v1187_v26 }
 0x33a   :  { %1483 = vmatprep.mubr.bf16.mxu1 %v2996_v0  ;;  %1596 = vmatprep.mubr.bf16.mxu0 %v2996_v0  ;;  %v3232_v0 = vld [vmem:[#allocation8 + $0x70] sm:$0xff]  }
 0x33b   :  { %2549 = vmatprep.subr.bf16.mxu0 %v3232_v0 }
 0x33c   :  { %2550 = vmatpush3.bf16.msra.mxu0 %v3234_v37 }
 0x33d   :  { %2551 = vmatprep.subr.bf16.mxu0 %v3238_v38 }
 0x340   :  { %2552 = vmatpush3.bf16.msra.mxu0 %v3240_v39 }
 0x341   :  { %1484 = vmatmul.mubr.bf16.gmra.mrb[56].mxu1 %v1188_v30  ;;  %1597 = vmatmul.mubr.bf16.gmra.mrb[60].mxu0 %v1188_v30 }
 0x3d8   :  { %v1416_v43 = vpop.f32.mrb[28].mxu1  ;;  %v1528_v44 = vpop.f32.mrb[32].mxu0 }
 0x3d9   :  { %v1692_v45 = vadd.f32 %v3248_v42, %v1528_v44  ;;  %v1417_v47 = vpop.f32.mrb[29].mxu1  ;;  %v1530_v49 = vpop.f32.mrb[33].mxu0 }
 0x3da   :  { %v1612_v51 = vadd.f32 %v3248_v42, %v1417_v47  ;;  %v1419_v52 = vpop.f32.mrb[30].mxu1  ;;  %v1532_v54 = vpop.f32.mrb[34].mxu0 }
 0x3db   :  { %v1708_v55 = vadd.f32 %v1692_v45, %v1419_v52  ;;  %v1421_v56 = vpop.f32.mrb[31].mxu1  ;;  %v1534_v57 = vpop.f32.mrb[35].mxu0  ;;  %v1693_v5 = vadd.f32 %v3248_v42, %v1532_v54 }
 0x3dc   :  { %v1613_v25 = vadd.f32 %v3248_v42, %v1421_v56  ;;  %v1660_v59 = vmul.f32 0.2, %v1612_v51  ;;  %vm1644_vm14 = vcmp.gt.f32.partialorder %v1612_v51, 0.0 }
 0x3dd   :  { %vm1724_vm13 = vcmp.gt.f32.partialorder %v1708_v55, 0.0  ;;  %v1740_v58 = vmul.f32 0.2, %v1708_v55 }
 0x3de   :  { %v1629_v60 = vadd.f32 %v1613_v25, %v1530_v49  ;;  %v1676_v2 = vsel %vm1644_vm14, %v1612_v51, %v1660_v59 }
 0x3df   :  { %v1756_v61 = vsel %vm1724_vm13, %v1708_v55, %v1740_v58 }
 0x3e0   :  { %vm1645_vm15 = vcmp.gt.f32.partialorder %v1629_v60, 0.0  ;;  %v1661_v62 = vmul.f32 0.2, %v1629_v60  ;;  %v1821_v1 = vpack.c.bf16 %v1756_v61, %v2997_v63 }
 0x3e2   :  { %v1677_v4 = vsel %vm1645_vm15, %v1629_v60, %v1661_v62  ;;  %1996 = vmatprep.mubr.bf16.mxu1 %v1821_v1 }
 0x3e3   :  { %v1772_v6 = vpack.c.bf16 %v1677_v4, %v1676_v2 }
 0x3e4   :  { %v1425_v7 = vpop.f32.mrb[32].mxu1  ;;  %v1538_v9 = vpop.f32.mrb[36].mxu0 }
 0x3e5   :  { %v1709_v10 = vadd.f32 %v1693_v5, %v1425_v7  ;;  %v1694_v11 = vadd.f32 %v3248_v42, %v1538_v9  ;;  %v1427_v12 = vpop.f32.mrb[33].mxu1  ;;  %v1540_v13 = vpop.f32.mrb[37].mxu0 }
 0x3e6   :  { %v1614_v14 = vadd.f32 %v3248_v42, %v1427_v12  ;;  %v1429_v15 = vpop.f32.mrb[34].mxu1  ;;  %v1542_v16 = vpop.f32.mrb[38].mxu0 }
 0x3e7   :  { %vm1725_vm0 = vcmp.gt.f32.partialorder %v1709_v10, 0.0  ;;  %v1741_v17 = vmul.f32 0.2, %v1709_v10  ;;  %v1710_v19 = vadd.f32 %v1694_v11, %v1429_v15  ;;  %v1431_v20 = vpop.f32.mrb[35].mxu1  ;;  %v1544_v21 = vpop.f32.mrb[39].mxu0  ;;  %v1695_v30 = vadd.f32 %v3248_v42, %v1542_v16 }
 0x3e8   :  { %v1630_v22 = vadd.f32 %v1614_v14, %v1534_v57  ;;  %v1615_v23 = vadd.f32 %v3248_v42, %v1431_v20 }
 0x3e9   :  { %vm1726_vm1 = vcmp.gt.f32.partialorder %v1710_v19, 0.0  ;;  %v1742_v24 = vmul.f32 0.2, %v1710_v19  ;;  %v1757_v27 = vsel %vm1725_vm0, %v1709_v10, %v1741_v17 }
 0x3ea   :  { %vm1646_vm2 = vcmp.gt.f32.partialorder %v1630_v22, 0.0  ;;  %v1662_v26 = vmul.f32 0.2, %v1630_v22  ;;  %v1631_v28 = vadd.f32 %v1615_v23, %v1540_v13  ;;  %v1773_v29 = vpack.c.bf16 %v1757_v27, %v1756_v61 }
 0x3eb   :  { %v1758_v35 = vsel %vm1726_vm1, %v1710_v19, %v1742_v24 }
 0x3ec   :  { %v1678_v36 = vsel %vm1646_vm2, %v1630_v22, %v1662_v26  ;;  %vm1647_vm3 = vcmp.gt.f32.partialorder %v1631_v28, 0.0  ;;  %v1663_v40 = vmul.f32 0.2, %v1631_v28  ;;  %v1435_v41 = vpop.f32.mrb[36].mxu1  ;;  %v1548_v43 = vpop.f32.mrb[40].mxu0  ;;  %2189 = vmatprep.mubr.bf16.mxu0 %v1773_v29  ;;  %v1823_v44 = vpack.c.bf16 %v1758_v35, %v1757_v27 }
 0x3ed   :  { %v1820_v45 = vpack.c.bf16 %v1678_v36, %v1677_v4  ;;  %v1711_v47 = vadd.f32 %v1695_v30, %v1435_v41  ;;  %v1696_v49 = vadd.f32 %v3248_v42, %v1548_v43  ;;  %v1437_v51 = vpop.f32.mrb[37].mxu1  ;;  %v1550_v52 = vpop.f32.mrb[41].mxu0  ;;  %2190 = vmatmul.mubr.bf16.vlgmr.msra.gmra.mrb[64].mxu0 %v1772_v6 }
 0x3ee   :  { %v1616_v54 = vadd.f32 %v3248_v42, %v1437_v51  ;;  %v1439_v55 = vpop.f32.mrb[38].mxu1  ;;  %v1552_v56 = vpop.f32.mrb[42].mxu0  ;;  %v1679_v57 = vsel %vm1647_vm3, %v1631_v28, %v1663_v40 }
 0x3ef   :  { %vm1727_vm4 = vcmp.gt.f32.partialorder %v1711_v47, 0.0  ;;  %v1743_v25 = vmul.f32 0.2, %v1711_v47  ;;  %v1712_v58 = vadd.f32 %v1696_v49, %v1439_v55  ;;  %v1441_v59 = vpop.f32.mrb[39].mxu1  ;;  %v1554_v60 = vpop.f32.mrb[43].mxu0  ;;  %1997 = vmatmul.mubr.bf16.vlgmr.msra.gmra.mrb[60].mxu1 %v1820_v45  ;;  %v1774_v1 = vpack.c.bf16 %v1679_v57, %v1678_v36 }
 0x3f0   :  { %v1632_v61 = vadd.f32 %v1616_v54, %v1544_v21  ;;  %v1617_v62 = vadd.f32 %v3248_v42, %v1441_v59  ;;  %2609 = vmatpush3.bf16.msra.mxu1 %v3168_v46  ;;  %2004 = vmatprep.mubr.bf16.mxu1 %v1823_v44  ;;  %v1697_v9 = vadd.f32 %v3248_v42, %v1552_v56 }
 0x3f1   :  { %vm1728_vm5 = vcmp.gt.f32.partialorder %v1712_v58, 0.0  ;;  %v1744_v2 = vmul.f32 0.2, %v1712_v58  ;;  %v1759_v4 = vsel %vm1727_vm4, %v1711_v47, %v1743_v25  ;;  %2602 = vmatprep.subr.bf16.mxu1 %v3170_v48 }
 0x3f2   :  { %vm1648_vm6 = vcmp.gt.f32.partialorder %v1632_v61, 0.0  ;;  %v1664_v5 = vmul.f32 0.2, %v1632_v61  ;;  %v1633_v6 = vadd.f32 %v1617_v62, %v1550_v52  ;;  %v1775_v7 = vpack.c.bf16 %v1759_v4, %v1758_v35 }
 0x3f3   :  { %v1760_v10 = vsel %vm1728_vm5, %v1712_v58, %v1744_v2 }
 0x3f4   :  { %vm1649_vm7 = vcmp.gt.f32.partialorder %v1633_v6, 0.0  ;;  %v1665_v11 = vmul.f32 0.2, %v1633_v6  ;;  %v1445_v12 = vpop.f32.mrb[40].mxu1  ;;  %v1558_v13 = vpop.f32.mrb[44].mxu0  ;;  %2197 = vmatprep.mubr.bf16.mxu0 %v1775_v7  ;;  %v1680_v46 = vsel %vm1648_vm6, %v1632_v61, %v1664_v5  ;;  %2610 = vmatpush3.bf16.msra.mxu1 %v3175_v50  ;;  %v1825_v14 = vpack.c.bf16 %v1760_v10, %v1759_v4 }
 0x3f5   :  { %v1713_v15 = vadd.f32 %v1697_v9, %v1445_v12  ;;  %v1698_v16 = vadd.f32 %v3248_v42, %v1558_v13  ;;  %v1447_v48 = vpop.f32.mrb[41].mxu1  ;;  %v1560_v17 = vpop.f32.mrb[45].mxu0  ;;  %2198 = vmatmul.mubr.bf16.gmra.mrb[68].mxu0 %v1774_v1  ;;  %v1822_v19 = vpack.c.bf16 %v1680_v46, %v1679_v57  ;;  %2603 = vmatprep.subr.bf16.mxu1 %v3179_v53 }
 0x3f6   :  { %v1618_v20 = vadd.f32 %v3248_v42, %v1447_v48  ;;  %v1449_v21 = vpop.f32.mrb[42].mxu1  ;;  %v1562_v22 = vpop.f32.mrb[46].mxu0  ;;  %v1681_v23 = vsel %vm1649_vm7, %v1633_v6, %v1665_v11 }
 0x3f7   :  { %vm1729_vm8 = vcmp.gt.f32.partialorder %v1713_v15, 0.0  ;;  %v1745_v24 = vmul.f32 0.2, %v1713_v15  ;;  %v1714_v27 = vadd.f32 %v1698_v16, %v1449_v21  ;;  %v1451_v50 = vpop.f32.mrb[43].mxu1  ;;  %v1564_v26 = vpop.f32.mrb[47].mxu0  ;;  %2005 = vmatmul.mubr.bf16.gmra.mrb[64].mxu1 %v1822_v19  ;;  %v1776_v30 = vpack.c.bf16 %v1681_v23, %v1680_v46 }
 0x3f8   :  { %v1634_v28 = vadd.f32 %v1618_v20, %v1554_v60  ;;  %v1619_v29 = vadd.f32 %v3248_v42, %v1451_v50  ;;  %2012 = vmatprep.mubr.bf16.mxu1 %v1825_v14  ;;  %2611 = vmatpush3.bf16.msra.mxu1 %v3184_v3  ;;  %v1699_v43 = vadd.f32 %v3248_v42, %v1562_v22 }
 0x3f9   :  { %vm1730_vm9 = vcmp.gt.f32.partialorder %v1714_v27, 0.0  ;;  %v1746_v53 = vmul.f32 0.2, %v1714_v27  ;;  %v1761_v35 = vsel %vm1729_vm8, %v1713_v15, %v1745_v24  ;;  %2604 = vmatprep.subr.bf16.mxu1 %v3187_v8 }
 0x3fa   :  { %vm1650_vm10 = vcmp.gt.f32.partialorder %v1634_v28, 0.0  ;;  %v1666_v36 = vmul.f32 0.2, %v1634_v28  ;;  %v1635_v40 = vadd.f32 %v1619_v29, %v1560_v17  ;;  %v1777_v41 = vpack.c.bf16 %v1761_v35, %v1760_v10 }
 0x3fb   :  { %v1762_v44 = vsel %vm1730_vm9, %v1714_v27, %v1746_v53 }
 0x3fc   :  { %vm1651_vm11 = vcmp.gt.f32.partialorder %v1635_v40, 0.0  ;;  %v1667_v45 = vmul.f32 0.2, %v1635_v40  ;;  %v1455_v47 = vpop.f32.mrb[44].mxu1  ;;  %v1568_v49 = vpop.f32.mrb[48].mxu0  ;;  %2205 = vmatprep.mubr.bf16.mxu0 %v1777_v41  ;;  %v1682_v51 = vsel %vm1650_vm10, %v1634_v28, %v1666_v36  ;;  %v1827_v52 = vpack.c.bf16 %v1762_v44, %v1761_v35  ;;  %2612 = vmatpush3.bf16.msra.mxu1 %v3192_v18 }
 0x3fd   :  { %v1715_v3 = vadd.f32 %v1699_v43, %v1455_v47  ;;  %v1700_v54 = vadd.f32 %v3248_v42, %v1568_v49  ;;  %v1457_v8 = vpop.f32.mrb[45].mxu1  ;;  %v1570_v55 = vpop.f32.mrb[49].mxu0  ;;  %2206 = vmatmul.mubr.bf16.gmra.mrb[72].mxu0 %v1776_v30  ;;  %v1824_v56 = vpack.c.bf16 %v1682_v51, %v1681_v23  ;;  %2605 = vmatprep.subr.bf16.mxu1 %v3220_v31 }
 0x3fe   :  { %v1620_v57 = vadd.f32 %v3248_v42, %v1457_v8  ;;  %v1459_v25 = vpop.f32.mrb[46].mxu1  ;;  %v1572_v58 = vpop.f32.mrb[50].mxu0  ;;  %v1683_v59 = vsel %vm1651_vm11, %v1635_v40, %v1667_v45 }
 0x3ff   :  { %vm1731_vm12 = vcmp.gt.f32.partialorder %v1715_v3, 0.0  ;;  %v1747_v60 = vmul.f32 0.2, %v1715_v3  ;;  %v1716_v61 = vadd.f32 %v1700_v54, %v1459_v25  ;;  %v1461_v62 = vpop.f32.mrb[47].mxu1  ;;  %v1574_v18 = vpop.f32.mrb[51].mxu0  ;;  %2013 = vmatmul.mubr.bf16.gmra.mrb[68].mxu1 %v1824_v56  ;;  %v1778_v4 = vpack.c.bf16 %v1683_v59, %v1682_v51 }
 0x400   :  { %v1636_v1 = vadd.f32 %v1620_v57, %v1564_v26  ;;  %v1621_v2 = vadd.f32 %v3248_v42, %v1461_v62  ;;  %2020 = vmatprep.mubr.bf16.mxu1 %v1827_v52  ;;  %2613 = vmatpush3.bf16.msra.mxu1 %v3222_v32  ;;  %v1701_v10 = vadd.f32 %v3248_v42, %v1572_v58 }
 0x401   :  { %vm1732_vm13 = vcmp.gt.f32.partialorder %v1716_v61, 0.0  ;;  %v1748_v31 = vmul.f32 0.2, %v1716_v61  ;;  %v1763_v5 = vsel %vm1731_vm12, %v1715_v3, %v1747_v60  ;;  %2606 = vmatprep.subr.bf16.mxu1 %v3226_v33 }
 0x402   :  { %vm1652_vm14 = vcmp.gt.f32.partialorder %v1636_v1, 0.0  ;;  %v1668_v6 = vmul.f32 0.2, %v1636_v1  ;;  %v1637_v7 = vadd.f32 %v1621_v2, %v1570_v55  ;;  %v1779_v9 = vpack.c.bf16 %v1763_v5, %v1762_v44 }
 0x403   :  { %v1764_v11 = vsel %vm1732_vm13, %v1716_v61, %v1748_v31 }
 0x404   :  { %vm1653_vm15 = vcmp.gt.f32.partialorder %v1637_v7, 0.0  ;;  %v1669_v12 = vmul.f32 0.2, %v1637_v7  ;;  %v1465_v13 = vpop.f32.mrb[48].mxu1  ;;  %v1578_v46 = vpop.f32.mrb[52].mxu0  ;;  %2213 = vmatprep.mubr.bf16.mxu0 %v1779_v9  ;;  %v1684_v14 = vsel %vm1652_vm14, %v1636_v1, %v1668_v6  ;;  %v1829_v15 = vpack.c.bf16 %v1764_v11, %v1763_v5  ;;  %2614 = vmatpush3.bf16.msra.mxu1 %v3228_v34 }
 0x405   :  { %v1717_v32 = vadd.f32 %v1701_v10, %v1465_v13  ;;  %v1702_v16 = vadd.f32 %v3248_v42, %v1578_v46  ;;  %v1467_v33 = vpop.f32.mrb[49].mxu1  ;;  %v1580_v48 = vpop.f32.mrb[53].mxu0  ;;  %2214 = vmatmul.mubr.bf16.gmra.mrb[76].mxu0 %v1778_v4  ;;  %v1826_v17 = vpack.c.bf16 %v1684_v14, %v1683_v59  ;;  %2607 = vmatprep.subr.bf16.mxu1 %v3232_v0 }
 0x406   :  { %v1622_v19 = vadd.f32 %v3248_v42, %v1467_v33  ;;  %v1469_v20 = vpop.f32.mrb[50].mxu1  ;;  %v1582_v21 = vpop.f32.mrb[54].mxu0  ;;  %v1685_v22 = vsel %vm1653_vm15, %v1637_v7, %v1669_v12 }
 0x407   :  { %vm1733_vm0 = vcmp.gt.f32.partialorder %v1717_v32, 0.0  ;;  %v1749_v23 = vmul.f32 0.2, %v1717_v32  ;;  %v1718_v24 = vadd.f32 %v1702_v16, %v1469_v20  ;;  %v1471_v27 = vpop.f32.mrb[51].mxu1  ;;  %v1584_v34 = vpop.f32.mrb[55].mxu0  ;;  %2021 = vmatmul.mubr.bf16.gmra.mrb[72].mxu1 %v1826_v17  ;;  %v1780_v28 = vpack.c.bf16 %v1685_v22, %v1684_v14 }
 0x408   :  { %v1638_v50 = vadd.f32 %v1622_v19, %v1574_v18  ;;  %v1623_v26 = vadd.f32 %v3248_v42, %v1471_v27  ;;  %2028 = vmatprep.mubr.bf16.mxu1 %v1829_v15  ;;  %2615 = vmatpush3.bf16.msra.mxu1 %v3234_v37  ;;  %v1703_v36 = vadd.f32 %v3248_v42, %v1582_v21 }
 0x409   :  { %vm1734_vm1 = vcmp.gt.f32.partialorder %v1718_v24, 0.0  ;;  %v1750_v0 = vmul.f32 0.2, %v1718_v24  ;;  %v1765_v29 = vsel %vm1733_vm0, %v1717_v32, %v1749_v23  ;;  %2608 = vmatprep.subr.bf16.mxu1 %v3238_v38 }
 0x40a   :  { %vm1654_vm2 = vcmp.gt.f32.partialorder %v1638_v50, 0.0  ;;  %v1670_v30 = vmul.f32 0.2, %v1638_v50  ;;  %v1639_v53 = vadd.f32 %v1623_v26, %v1580_v48  ;;  %v1781_v35 = vpack.c.bf16 %v1765_v29, %v1764_v11 }
 0x40b   :  { %v1766_v40 = vsel %vm1734_vm1, %v1718_v24, %v1750_v0 }
 0x40c   :  { %vm1655_vm3 = vcmp.gt.f32.partialorder %v1639_v53, 0.0  ;;  %v1671_v41 = vmul.f32 0.2, %v1639_v53  ;;  %v1475_v43 = vpop.f32.mrb[52].mxu1  ;;  %v1588_v44 = vpop.f32.mrb[56].mxu0  ;;  %2221 = vmatprep.mubr.bf16.mxu0 %v1781_v35  ;;  %v1686_v45 = vsel %vm1654_vm2, %v1638_v50, %v1670_v30  ;;  %v1831_v47 = vpack.c.bf16 %v1766_v40, %v1765_v29  ;;  %2616 = vmatpush3.bf16.msra.mxu1 %v3240_v39 }
 0x40d   :  { %v1719_v37 = vadd.f32 %v1703_v36, %v1475_v43  ;;  %v1704_v49 = vadd.f32 %v3248_v42, %v1588_v44  ;;  %v1477_v38 = vpop.f32.mrb[53].mxu1  ;;  %v1590_v51 = vpop.f32.mrb[57].mxu0  ;;  %2222 = vmatmul.mubr.bf16.gmra.mrb[80].mxu0 %v1780_v28  ;;  %v1828_v52 = vpack.c.bf16 %v1686_v45, %v1685_v22 }
 0x40e   :  { %v1624_v3 = vadd.f32 %v3248_v42, %v1477_v38  ;;  %v1479_v54 = vpop.f32.mrb[54].mxu1  ;;  %v1592_v8 = vpop.f32.mrb[58].mxu0  ;;  %v1687_v55 = vsel %vm1655_vm3, %v1639_v53, %v1671_v41 }
 0x40f   :  { %vm1735_vm4 = vcmp.gt.f32.partialorder %v1719_v37, 0.0  ;;  %v1751_v56 = vmul.f32 0.2, %v1719_v37  ;;  %v1720_v57 = vadd.f32 %v1704_v49, %v1479_v54  ;;  %v1481_v25 = vpop.f32.mrb[55].mxu1  ;;  %v1594_v58 = vpop.f32.mrb[59].mxu0  ;;  %2029 = vmatmul.mubr.bf16.gmra.mrb[76].mxu1 %v1828_v52  ;;  %v1782_v60 = vpack.c.bf16 %v1687_v55, %v1686_v45 }
 0x410   :  { %v1640_v39 = vadd.f32 %v1624_v3, %v1584_v34  ;;  %v1625_v59 = vadd.f32 %v3248_v42, %v1481_v25  ;;  %2036 = vmatprep.mubr.bf16.mxu1 %v1831_v47  ;;  %v1705_v4 = vadd.f32 %v3248_v42, %v1592_v8 }
 0x411   :  { %vm1736_vm5 = vcmp.gt.f32.partialorder %v1720_v57, 0.0  ;;  %v1752_v61 = vmul.f32 0.2, %v1720_v57  ;;  %v1767_v62 = vsel %vm1735_vm4, %v1719_v37, %v1751_v56 }
 0x412   :  { %vm1656_vm6 = vcmp.gt.f32.partialorder %v1640_v39, 0.0  ;;  %v1672_v18 = vmul.f32 0.2, %v1640_v39  ;;  %v1641_v1 = vadd.f32 %v1625_v59, %v1590_v51  ;;  %v1783_v2 = vpack.c.bf16 %v1767_v62, %v1766_v40 }
 0x413   :  { %v1768_v31 = vsel %vm1736_vm5, %v1720_v57, %v1752_v61 }
 0x414   :  { %vm1657_vm7 = vcmp.gt.f32.partialorder %v1641_v1, 0.0  ;;  %v1673_v5 = vmul.f32 0.2, %v1641_v1  ;;  %v1485_v6 = vpop.f32.mrb[56].mxu1  ;;  %v1598_v7 = vpop.f32.mrb[60].mxu0  ;;  %2229 = vmatprep.mubr.bf16.mxu0 %v1783_v2  ;;  %v1688_v9 = vsel %vm1656_vm6, %v1640_v39, %v1672_v18  ;;  %v1833_v10 = vpack.c.bf16 %v1768_v31, %v1767_v62 }
 0x415   :  { %v1721_v11 = vadd.f32 %v1705_v4, %v1485_v6  ;;  %v1706_v12 = vadd.f32 %v3248_v42, %v1598_v7  ;;  %v1487_v13 = vpop.f32.mrb[57].mxu1  ;;  %v1600_v46 = vpop.f32.mrb[61].mxu0  ;;  %2230 = vmatmul.mubr.bf16.gmra.mrb[84].mxu0 %v1782_v60  ;;  %v1830_v14 = vpack.c.bf16 %v1688_v9, %v1687_v55  ;;  %v3308_v55 = vld [vmem:[%s3345_s7] ss:$0 sm:$0xff]  ;;  %s2998_s7 = smov [#allocation11]  }
 0x416   :  { %v1626_v15 = vadd.f32 %v3248_v42, %v1487_v13  ;;  %v1489_v32 = vpop.f32.mrb[58].mxu1  ;;  %v1602_v16 = vpop.f32.mrb[62].mxu0  ;;  %v1689_v33 = vsel %vm1657_vm7, %v1641_v1, %v1673_v5  ;;  %s2298_s29 = sshll.u32 %s2998_s7, 4  ;;  %s2299_s29 = int_to_ptr.vmem [resolvable:$true] %s2298_s29 }
 0x417   :  { %vm1737_vm8 = vcmp.gt.f32.partialorder %v1721_v11, 0.0  ;;  %v1753_v48 = vmul.f32 0.2, %v1721_v11  ;;  %v1722_v17 = vadd.f32 %v1706_v12, %v1489_v32  ;;  %v1707_v19 = vadd.f32 %v3248_v42, %v1602_v16  ;;  %v1491_v20 = vpop.f32.mrb[59].mxu1  ;;  %v1604_v21 = vpop.f32.mrb[63].mxu0  ;;  %2037 = vmatmul.mubr.bf16.gmra.mrb[80].mxu1 %v1830_v14  ;;  %s2955_s30 = scalar_lea.vmem %s2299_s29, 2048  ;;  %p2960_p13 = scmp.lt.s32.totalorder %s2299_s29, %s2299_s29 }
 0x418   :  { %v1642_v22 = vadd.f32 %v1626_v15, %v1594_v58  ;;  %v1627_v23 = vadd.f32 %v3248_v42, %v1491_v20  ;;  %2044 = vmatprep.mubr.bf16.mxu1 %v1833_v10  ;;  %v1784_v24 = vpack.c.bf16 %v1689_v33, %v1688_v9  ;;  %p2956_p12 = scmp.ne.s32.totalorder %s2299_s29, %s2955_s30  ;;  %p2961_p0 = scmp.lt.s32.totalorder %s2955_s30, %s2955_s30 }
 0x419   :  { %vm1738_vm9 = vcmp.gt.f32.partialorder %v1722_v17, 0.0  ;;  %v1754_v27 = vmul.f32 0.2, %v1722_v17  ;;  %vm1739_vm10 = vcmp.gt.f32.partialorder %v1707_v19, 0.0  ;;  %v1755_v34 = vmul.f32 0.2, %v1707_v19 }
 0x41a   :  { %vm1658_vm11 = vcmp.gt.f32.partialorder %v1642_v22, 0.0  ;;  %v1674_v50 = vmul.f32 0.2, %v1642_v22  ;;  %v1643_v26 = vadd.f32 %v1627_v23, %v1600_v46  ;;  %v1769_v28 = vsel %vm1737_vm8, %v1721_v11, %v1753_v48  ;;  %p2962_p1 = por %p2961_p0, %p2960_p13 }
 0x41b   :  { %v1785_v0 = vpack.c.bf16 %v1769_v28, %v1768_v31  ;;  %v1770_v29 = vsel %vm1738_vm9, %v1722_v17, %v1754_v27  ;;  %v1771_v30 = vsel %vm1739_vm10, %v1707_v19, %v1755_v34 }
 0x41c   :  { %vm1659_vm12 = vcmp.gt.f32.partialorder %v1643_v26, 0.0  ;;  %v1675_v53 = vmul.f32 0.2, %v1643_v26  ;;  %v1690_v35 = vsel %vm1658_vm11, %v1642_v22, %v1674_v50  ;;  %v1835_v36 = vpack.c.bf16 %v1770_v29, %v1769_v28  ;;  %p2963_p2 = pnand %p2962_p1, %p2956_p12 }
 0x41d   :  { %2237 = vmatprep.mubr.bf16.mxu0 %v1785_v0  ;;  %v1832_v42 = vpack.c.bf16 %v1690_v35, %v1689_v33  ;;  %v1787_v40 = vpack.c.bf16 %v1771_v30, %v1770_v29 }
 0x41e   :  { %2238 = vmatmul.mubr.bf16.gmra.mrb[88].mxu0 %v1784_v24  ;;  %v1691_v41 = vsel %vm1659_vm12, %v1643_v26, %v1675_v53 }
 0x41f   :  { %2045 = vmatmul.mubr.bf16.gmra.mrb[84].mxu1 %v1832_v42  ;;  %v1786_v43 = vpack.c.bf16 %v1691_v41, %v1690_v35  ;;  %v1834_v44 = vpack.c.bf16 %v2997_v63, %v1691_v41 }
 0x420   :  { %2052 = vmatprep.mubr.bf16.mxu1 %v1835_v36 }
 0x427   :  { %2053 = vmatmul.mubr.bf16.gmra.mrb[88].mxu1 %v1834_v44 }
 0x428   :  { %2245 = vmatprep.mubr.bf16.mxu1 %v1787_v40 }
 0x42f   :  { %2246 = vmatmul.mubr.bf16.vlgmr.msra.gmra.mrb[92].mxu1 %v1786_v43 }
 0x4c0   :  { %v2553_v45 = vpop.f32.mrb[64].mxu0 }
 0x4c1   :  { %v2554_v47 = vpop.f32.mrb[65].mxu0 }
 0x4c2   :  { %v2555_v37 = vadd.f32 %v2554_v47, %v2553_v45  ;;  %v2489_v49 = vpop.f32.mrb[60].mxu1  ;;  %v2556_v38 = vpop.f32.mrb[66].mxu0 }
 0x4c3   :  { %v2490_v51 = vpop.f32.mrb[61].mxu1  ;;  %v2557_v52 = vpop.f32.mrb[67].mxu0 }
 0x4c4   :  { %v2491_v3 = vadd.f32 %v2490_v51, %v2489_v49  ;;  %v2558_v54 = vadd.f32 %v2557_v52, %v2556_v38  ;;  %v2492_v8 = vpop.f32.mrb[62].mxu1 }
 0x4c5   :  { %v2493_v63 = vpop.f32.mrb[63].mxu1 }
 0x4c6   :  { %v2192_v56 = vadd.f32 %v2555_v37, %v2491_v3  ;;  %v2494_v57 = vadd.f32 %v2493_v63, %v2492_v8 }
 0x4c8   :  { %v2261_v25 = vadd.f32 %v3308_v55, %v2192_v56  ;;  %v2195_v58 = vadd.f32 %v2558_v54, %v2494_v57  ;;  %v2559_v39 = vpop.f32.mrb[68].mxu0 }
 0x4c9   :  { %v2560_v59 = vpop.f32.mrb[69].mxu0 }
 0x4ca   :  { %2277 = vst [vmem:[#allocation11] sm:$0xff] %v2261_v25  ;;  %v2262_v60 = vadd.f32 %v3308_v55, %v2195_v58  ;;  %v2561_v61 = vadd.f32 %v2560_v59, %v2559_v39  ;;  %v2495_v62 = vpop.f32.mrb[64].mxu1  ;;  %v2562_v18 = vpop.f32.mrb[70].mxu0 }
 0x4cb   :  { %v2496_v1 = vpop.f32.mrb[65].mxu1  ;;  %v2563_v2 = vpop.f32.mrb[71].mxu0 }
 0x4cc   :  { %2278 = vst [vmem:[#allocation11 + $0x8] sm:$0xff] %v2262_v60  ;;  %v2497_v4 = vadd.f32 %v2496_v1, %v2495_v62  ;;  %v2564_v31 = vadd.f32 %v2563_v2, %v2562_v18  ;;  %v2498_v5 = vpop.f32.mrb[66].mxu1 }
 0x4cd   :  { %v2499_v6 = vpop.f32.mrb[67].mxu1 }
 0x4ce   :  { %v2200_v7 = vadd.f32 %v2561_v61, %v2497_v4  ;;  %v2500_v9 = vadd.f32 %v2499_v6, %v2498_v5 }
 0x4d0   :  { %v2263_v10 = vadd.f32 %v3308_v55, %v2200_v7  ;;  %v2203_v11 = vadd.f32 %v2564_v31, %v2500_v9  ;;  %v2565_v12 = vpop.f32.mrb[72].mxu0 }
 0x4d1   :  { %v2566_v13 = vpop.f32.mrb[73].mxu0 }
 0x4d2   :  { %2279 = vst [vmem:[#allocation11 + $0x10] sm:$0xff] %v2263_v10  ;;  %v2264_v46 = vadd.f32 %v3308_v55, %v2203_v11  ;;  %v2567_v14 = vadd.f32 %v2566_v13, %v2565_v12  ;;  %v2501_v15 = vpop.f32.mrb[68].mxu1  ;;  %v2568_v32 = vpop.f32.mrb[74].mxu0 }
 0x4d3   :  { %v2502_v16 = vpop.f32.mrb[69].mxu1  ;;  %v2569_v33 = vpop.f32.mrb[75].mxu0 }
 0x4d4   :  { %2280 = vst [vmem:[#allocation11 + $0x18] sm:$0xff] %v2264_v46  ;;  %v2503_v48 = vadd.f32 %v2502_v16, %v2501_v15  ;;  %v2570_v17 = vadd.f32 %v2569_v33, %v2568_v32  ;;  %v2504_v19 = vpop.f32.mrb[70].mxu1 }
 0x4d5   :  { %v2505_v20 = vpop.f32.mrb[71].mxu1 }
 0x4d6   :  { %v2208_v21 = vadd.f32 %v2567_v14, %v2503_v48  ;;  %v2506_v22 = vadd.f32 %v2505_v20, %v2504_v19 }
 0x4d8   :  { %v2265_v23 = vadd.f32 %v3308_v55, %v2208_v21  ;;  %v2211_v24 = vadd.f32 %v2570_v17, %v2506_v22  ;;  %v2571_v27 = vpop.f32.mrb[76].mxu0 }
 0x4d9   :  { %v2572_v34 = vpop.f32.mrb[77].mxu0 }
 0x4da   :  { %2281 = vst [vmem:[#allocation11 + $0x20] sm:$0xff] %v2265_v23  ;;  %v2266_v50 = vadd.f32 %v3308_v55, %v2211_v24  ;;  %v2573_v26 = vadd.f32 %v2572_v34, %v2571_v27  ;;  %v2507_v28 = vpop.f32.mrb[72].mxu1  ;;  %v2574_v0 = vpop.f32.mrb[78].mxu0 }
 0x4db   :  { %v2508_v29 = vpop.f32.mrb[73].mxu1  ;;  %v2575_v30 = vpop.f32.mrb[79].mxu0 }
 0x4dc   :  { %2282 = vst [vmem:[#allocation11 + $0x28] sm:$0xff] %v2266_v50  ;;  %v2509_v53 = vadd.f32 %v2508_v29, %v2507_v28  ;;  %v2576_v35 = vadd.f32 %v2575_v30, %v2574_v0  ;;  %v2510_v36 = vpop.f32.mrb[74].mxu1 }
 0x4dd   :  { %v2511_v42 = vpop.f32.mrb[75].mxu1 }
 0x4de   :  { %v2216_v40 = vadd.f32 %v2573_v26, %v2509_v53  ;;  %v2512_v41 = vadd.f32 %v2511_v42, %v2510_v36 }
 0x4e0   :  { %v2267_v43 = vadd.f32 %v3308_v55, %v2216_v40  ;;  %v2219_v44 = vadd.f32 %v2576_v35, %v2512_v41  ;;  %v2577_v45 = vpop.f32.mrb[80].mxu0 }
 0x4e1   :  { %v2578_v47 = vpop.f32.mrb[81].mxu0 }
 0x4e2   :  { %2283 = vst [vmem:[#allocation11 + $0x30] sm:$0xff] %v2267_v43  ;;  %v2268_v37 = vadd.f32 %v3308_v55, %v2219_v44  ;;  %v2579_v49 = vadd.f32 %v2578_v47, %v2577_v45  ;;  %v2513_v38 = vpop.f32.mrb[76].mxu1  ;;  %v2580_v51 = vpop.f32.mrb[82].mxu0 }
 0x4e3   :  { %v2514_v52 = vpop.f32.mrb[77].mxu1  ;;  %v2581_v3 = vpop.f32.mrb[83].mxu0 }
 0x4e4   :  { %2284 = vst [vmem:[#allocation11 + $0x38] sm:$0xff] %v2268_v37  ;;  %v2515_v54 = vadd.f32 %v2514_v52, %v2513_v38  ;;  %v2582_v8 = vadd.f32 %v2581_v3, %v2580_v51  ;;  %v2516_v63 = vpop.f32.mrb[78].mxu1 }
 0x4e5   :  { %v2517_v56 = vpop.f32.mrb[79].mxu1 }
 0x4e6   :  { %v2224_v57 = vadd.f32 %v2579_v49, %v2515_v54  ;;  %v2518_v25 = vadd.f32 %v2517_v56, %v2516_v63 }
 0x4e8   :  { %v2269_v58 = vadd.f32 %v3308_v55, %v2224_v57  ;;  %v2227_v39 = vadd.f32 %v2582_v8, %v2518_v25  ;;  %v2583_v59 = vpop.f32.mrb[84].mxu0 }
 0x4e9   :  { %v2584_v60 = vpop.f32.mrb[85].mxu0 }
 0x4ea   :  { %2285 = vst [vmem:[#allocation11 + $0x40] sm:$0xff] %v2269_v58  ;;  %v2270_v61 = vadd.f32 %v3308_v55, %v2227_v39  ;;  %v2585_v62 = vadd.f32 %v2584_v60, %v2583_v59  ;;  %v2519_v18 = vpop.f32.mrb[80].mxu1  ;;  %v2586_v1 = vpop.f32.mrb[86].mxu0 }
 0x4eb   :  { %v2520_v2 = vpop.f32.mrb[81].mxu1  ;;  %v2587_v4 = vpop.f32.mrb[87].mxu0 }
 0x4ec   :  { %2286 = vst [vmem:[#allocation11 + $0x48] sm:$0xff] %v2270_v61  ;;  %v2521_v31 = vadd.f32 %v2520_v2, %v2519_v18  ;;  %v2588_v5 = vadd.f32 %v2587_v4, %v2586_v1  ;;  %v2522_v6 = vpop.f32.mrb[82].mxu1 }
 0x4ed   :  { %v2523_v7 = vpop.f32.mrb[83].mxu1 }
 0x4ee   :  { %v2232_v9 = vadd.f32 %v2585_v62, %v2521_v31  ;;  %v2524_v10 = vadd.f32 %v2523_v7, %v2522_v6 }
 0x4f0   :  { %v2271_v11 = vadd.f32 %v3308_v55, %v2232_v9  ;;  %v2235_v12 = vadd.f32 %v2588_v5, %v2524_v10 }
 0x4f1   :  { %v2589_v13 = vpop.f32.mrb[88].mxu0 }
 0x4f2   :  { %2287 = vst [vmem:[#allocation11 + $0x50] sm:$0xff] %v2271_v11  ;;  %v2272_v46 = vadd.f32 %v3308_v55, %v2235_v12  ;;  %v2590_v14 = vpop.f32.mrb[89].mxu0  ;;  %v2525_v15 = vpop.f32.mrb[84].mxu1 }
 0x4f3   :  { %v2591_v32 = vadd.f32 %v2590_v14, %v2589_v13  ;;  %v2592_v16 = vpop.f32.mrb[90].mxu0  ;;  %v2526_v33 = vpop.f32.mrb[85].mxu1 }
 0x4f4   :  { %2288 = vst [vmem:[#allocation11 + $0x58] sm:$0xff] %v2272_v46  ;;  %v2527_v48 = vadd.f32 %v2526_v33, %v2525_v15  ;;  %v2593_v17 = vpop.f32.mrb[91].mxu0  ;;  %v2528_v19 = vpop.f32.mrb[86].mxu1 }
 0x4f5   :  { %v2594_v20 = vadd.f32 %v2593_v17, %v2592_v16  ;;  %v2529_v21 = vpop.f32.mrb[87].mxu1 }
 0x4f6   :  { %v2240_v22 = vadd.f32 %v2591_v32, %v2527_v48  ;;  %v2530_v23 = vadd.f32 %v2529_v21, %v2528_v19 }
 0x4f8   :  { %v2273_v24 = vadd.f32 %v3308_v55, %v2240_v22  ;;  %v2243_v27 = vadd.f32 %v2594_v20, %v2530_v23 }
 0x4fa   :  { %2289 = vst [vmem:[#allocation11 + $0x60] sm:$0xff] %v2273_v24  ;;  %v2274_v34 = vadd.f32 %v3308_v55, %v2243_v27  ;;  %v2531_v50 = vpop.f32.mrb[88].mxu1 }
 0x4fb   :  { %v2532_v26 = vpop.f32.mrb[89].mxu1 }
 0x4fc   :  { %2290 = vst [vmem:[#allocation11 + $0x68] sm:$0xff] %v2274_v34  ;;  %v2533_v28 = vadd.f32 %v2532_v26, %v2531_v50  ;;  %v2534_v0 = vpop.f32.mrb[90].mxu1 }
 0x4fd   :  { %v2535_v29 = vpop.f32.mrb[91].mxu1 }
 0x4fe   :  { %v2536_v30 = vadd.f32 %v2535_v29, %v2534_v0 }
 0x502   :  { %v2595_v53 = vpop.f32.mrb[92].mxu1 }
 0x503   :  { %v2596_v35 = vpop.f32.mrb[93].mxu1 }
 0x504   :  { %v2597_v36 = vadd.f32 %v2596_v35, %v2595_v53  ;;  %v2598_v42 = vpop.f32.mrb[94].mxu1 }
 0x505   :  { %v2599_v40 = vpop.f32.mrb[95].mxu1 }
 0x506   :  { %v2248_v41 = vadd.f32 %v2597_v36, %v2533_v28  ;;  %v2600_v43 = vadd.f32 %v2599_v40, %v2598_v42 }
 0x508   :  { %v2275_v44 = vadd.f32 %v3308_v55, %v2248_v41  ;;  %v2251_v45 = vadd.f32 %v2600_v43, %v2536_v30 }
 0x50a   :  { %2291 = vst [vmem:[#allocation11 + $0x70] sm:$0xff] %v2275_v44  ;;  %v2276_v47 = vadd.f32 %v3308_v55, %v2251_v45 }
 0x50c   :  { %2292 = vst [vmem:[#allocation11 + $0x78] sm:$0xff] %v2276_v47 }
 0x50d   :  { %2966 = shalt.err (!%p2963_p2)
}
 0x50e   :  { %s2967_s10 = scalar_lea.hbm %s3346_s8, 2048 }
 0x50f   :  { %p2968_p3 = scmp.ne.s32.totalorder %s3346_s8, %s2967_s10  ;;  %p2971_p4 = scmp.lt.u32.totalorder %s2967_s10, %s3346_s8 }
 0x511   :  { %p2973_p5 = pnand %p2971_p4, %p2968_p3 }
 0x513   :  { %2976 = shalt.err (!%p2973_p5)
}
 0x514   :  { %s2999_s16 = smov 128   ;;  %s3000_s17 = smov 8  }
 0x515   :  { %2304 = dma.vmem_to_hbm [thread:$0]  %s2299_s29, 2048, %s3346_s8, [#allocation4], %s2999_s16, %s2999_s16, %s3000_s17  }
 0x516   :  { %2983 = dma.done.wait [#allocation4], 2048  }
 0x517   :  { %2984 = vsyncadd [#allocation4], 4294965248 }
 0x518   :  { %2308 = vsyncpa [#allocation3], 1 }
 0x519   :  { %2309 = vsyncpa [#allocation6], 1 }
 0x51a   :  { %2310 = vsyncpa [#allocation9], 1 }
 0x51b   :  { %2311 = vsyncpa [#allocation4], 1 }

</bundles_post_ra>
